<compile_context>
chip_gen: v6e
topology: v6e:2x2x1
jax: 0.10.0
libtpu: 0.0.40
codegen_flags: <defaults>
</compile_context>

<pallas_src>
import functools
import math

import jax
import jax.numpy as jnp
from jax.experimental import pallas as pl
from jax.experimental.pallas import tpu as pltpu


_VMEM_LIMIT_BYTES = 48 * 1024 * 1024      # below v7x's 64 MiB physical VMEM, above default scoped limit
_VMEM_TILE_BUDGET = 24 * 1024 * 1024      # target for double-buffered pipelined tiles


def _round_up(x, m):
    return ((x + m - 1) // m) * m


# ------------------------------ Pallas kernels ------------------------------

def _gemm_bias_kernel(a_ref, w_ref, b_ref, o_ref):
    acc = jnp.dot(a_ref[...], w_ref[...], preferred_element_type=jnp.float32)
    o_ref[...] = (acc + b_ref[...]).astype(o_ref.dtype)


def _gemm_bias_gdn_kernel(a_ref, w_ref, b_ref, g_ref, beta_ref, o_ref, *, inverse):
    # conv output (bf16 x bf16 -> f32 accumulate) + bias, then fused (I)GDN epilogue on the
    # tile while it is still in VMEM: norm = (y*y) @ gamma^T + beta ; y *= sqrt/rsqrt(norm)
    acc = jnp.dot(a_ref[...], w_ref[...], preferred_element_type=jnp.float32) + b_ref[...]
    norm = jnp.dot(acc * acc, g_ref[...], preferred_element_type=jnp.float32) + beta_ref[...]
    scale = jnp.sqrt(norm) if inverse else jax.lax.rsqrt(norm)
    o_ref[...] = (acc * scale).astype(o_ref.dtype)


def _pick_row_tile(P, K, Nout):
    """Largest row tile (multiple of 16) whose double-buffered tiles fit the VMEM budget."""
    fixed = 2 * K * Nout * 2 + 2 * Nout * Nout * 4 + 8 * Nout * 4   # weight + gamma + biases
    per_row = 2 * (K * 2) + 2 * (Nout * 4)                          # bf16 input + f32 output, 2 bufs
    tm = (_VMEM_TILE_BUDGET - fixed) // max(per_row, 1)
    tm = int(max(16, min(tm, 1024)))
    tm -= tm % 16
    tm = min(tm, _round_up(P, 16))
    return max(tm, 16)


def fused_conv_gemm(cols, wm, bias, gamma_t=None, beta=None, *,
                    inverse=True, out_dtype=jnp.bfloat16):
    """(P,K) @ (K,N) + bias, optionally fused with (I)GDN, row-tiled over a parallel grid."""
    P, K = cols.shape
    Nout = wm.shape[1]

    a = cols.astype(jnp.bfloat16)
    w = wm.astype(jnp.bfloat16)
    b2 = bias.reshape(1, Nout).astype(jnp.float32)

    tm = _pick_row_tile(P, K, Nout)
    Ppad = _round_up(P, tm)
    if Ppad != P:
        a = jnp.pad(a, ((0, Ppad - P), (0, 0)))

    in_specs = [pl.BlockSpec((tm, K), lambda i: (i, 0)),
                pl.BlockSpec((K, Nout), lambda i: (0, 0)),
                pl.BlockSpec((1, Nout), lambda i: (0, 0))]
    args = [a, w, b2]
    if gamma_t is None:
        kernel = _gemm_bias_kernel
    else:
        kernel = functools.partial(_gemm_bias_gdn_kernel, inverse=inverse)
        in_specs += [pl.BlockSpec((Nout, Nout), lambda i: (0, 0)),
                     pl.BlockSpec((1, Nout), lambda i: (0, 0))]
        args += [gamma_t.astype(jnp.float32), beta.reshape(1, Nout).astype(jnp.float32)]

    out = pl.pallas_call(
        kernel,
        out_shape=jax.ShapeDtypeStruct((Ppad, Nout), out_dtype),
        grid=(Ppad // tm,),
        in_specs=in_specs,
        out_specs=pl.BlockSpec((tm, Nout), lambda i: (i, 0)),
        compiler_params=pltpu.CompilerParams(
            dimension_semantics=("parallel",),
            vmem_limit_bytes=_VMEM_LIMIT_BYTES),
    )(*args)
    return out[:P] if Ppad != P else out


# ------------------------------- conv glue ----------------------------------

def _im2col_3x3(x_pad, Ho, Wo):
    # TODO(synk): im2col stays XLA glue (9x duplicated patch reads); fully in-kernel tap
    # accumulation via element-offset index_maps is not implemented.
    cols = []
    for a in range(3):
        for b in range(3):
            cols.append(x_pad[:, a:a + Ho, b:b + Wo, :])
    return jnp.concatenate(cols, axis=-1).reshape(-1, 9 * x_pad.shape[-1])


def deconv3s1(x, w, b, gdn=None, out_dtype=jnp.bfloat16):
    # ConvTranspose2d(Cin, Cout, 3, stride=1, padding=1) == correlation with the spatially
    # flipped kernel and padding 1 (same spatial size).  x: NHWC, w: (Cin, Cout, 3, 3).
    B, H, W, Cin = x.shape
    Cout = w.shape[1]
    xp = jnp.pad(x, ((0, 0), (1, 1), (1, 1), (0, 0)))
    cols = _im2col_3x3(xp, H, W)                                       # (B*H*W, 9*Cin)
    wm = jnp.transpose(jnp.flip(w, (2, 3)), (2, 3, 0, 1)).reshape(9 * Cin, Cout)
    if gdn is not None:
        out = fused_conv_gemm(cols, wm, b, gdn['gamma_t'], gdn['beta'],
                              inverse=True, out_dtype=out_dtype)
    else:
        out = fused_conv_gemm(cols, wm, b, out_dtype=out_dtype)
    return out.reshape(B, H, W, Cout)


# stride-2 / k=5 / pad=2 / output_padding=1 transposed conv via sub-pixel decomposition.
# Per axis: output parity r and un-dilated 3-tap window index t (over x[m-1], x[m], x[m+1])
# select kernel index k; (r,t) pairs not listed contribute nothing.
_SUBPIX_TAP_TO_K = {(0, 0): 4, (0, 1): 2, (0, 2): 0, (1, 1): 3, (1, 2): 1}


def _subpixel_weight(w, cout_pad):
    # w: (Cin, Cout, 5, 5) -> (9*Cin, 4*cout_pad); rows ordered (ty, tx, ci), cols (ry, rx, co)
    Cin, Cout = w.shape[0], w.shape[1]
    wb = jnp.zeros((3, 3, Cin, 2, 2, cout_pad), w.dtype)
    for (ry, ty), ky in _SUBPIX_TAP_TO_K.items():
        for (rx, tx), kx in _SUBPIX_TAP_TO_K.items():
            wb = wb.at[ty, tx, :, ry, rx, :Cout].set(w[:, :, ky, kx])
    return wb.reshape(9 * Cin, 4 * cout_pad)


def deconv5s2(x, w, b, gdn=None, out_dtype=jnp.bfloat16):
    # One GEMM on the UN-dilated input producing all 4 output parities lane-packed, then interleave.
    B, H, W, Cin = x.shape
    Cout = w.shape[1]
    cp = _round_up(Cout, 8)                          # lane padding for the small final layer
    xp = jnp.pad(x, ((0, 0), (1, 1), (1, 1), (0, 0)))
    cols = _im2col_3x3(xp, H, W)                     # 9 taps shared by all four phases
    wm = _subpixel_weight(w, cp)                     # (9*Cin, 4*cp)
    bias = jnp.tile(jnp.pad(b, (0, cp - Cout)), 4)
    if gdn is not None:
        gt = jnp.pad(gdn['gamma_t'], ((0, cp - Cout), (0, cp - Cout)))
        gt_big = jnp.kron(jnp.eye(4, dtype=jnp.float32), gt)          # block-diag: IGDN per phase
        beta_big = jnp.tile(jnp.pad(gdn['beta'], (0, cp - Cout), constant_values=1.0), 4)
        out = fused_conv_gemm(cols, wm, bias, gt_big, beta_big,
                              inverse=True, out_dtype=out_dtype)
    else:
        out = fused_conv_gemm(cols, wm, bias, out_dtype=out_dtype)
    out = out.reshape(B, H, W, 2, 2, cp)
    out = jnp.transpose(out, (0, 1, 3, 2, 4, 5)).reshape(B, 2 * H, 2 * W, cp)
    return out[..., :Cout]


# ------------------------------- parameters ---------------------------------

def init_params(key, N, M):
    # NOTE: the PyTorch g_s declares its 2nd deconv as deconv(M, N, ...) even though the preceding
    # GDN(N) emits N channels, so (exactly as in the original module) it only runs when M == N.
    assert M == N, "FactorizedPriorDecoder.g_s as defined requires M == N"
    keys = jax.random.split(key, 16)
    ki = iter(keys)

    def deconv_w(cin, cout, k):
        # kaiming_normal_: PyTorch fan_in for ConvTranspose2d weight = weight.size(1)*k*k = cout*k*k
        std = math.sqrt(2.0 / (cout * k * k))
        return std * jax.random.normal(next(ki), (cin, cout, k, k), jnp.float32)

    def gdn_p(c):
        # compressAI GDN defaults after NonNegativeParametrizer reparam: beta ~ 1, gamma ~ 0.1*I
        beta = 1.0 + 0.01 * jax.random.uniform(next(ki), (c,), jnp.float32)
        gamma = (0.1 * jnp.eye(c, dtype=jnp.float32)
                 + 0.001 * jax.random.uniform(next(ki), (c, c), jnp.float32))
        return {'beta': beta, 'gamma_t': gamma.T}

    g_s = [
        {'w': deconv_w(M, N, 3), 'b': jnp.zeros((N,), jnp.float32)}, gdn_p(N),
        {'w': deconv_w(M, N, 3), 'b': jnp.zeros((N,), jnp.float32)}, gdn_p(N),
        {'w': deconv_w(N, N, 5), 'b': jnp.zeros((N,), jnp.float32)}, gdn_p(N),
        {'w': deconv_w(N, 3, 5), 'b': jnp.zeros((3,), jnp.float32)},
    ]
    # TODO(synk): EntropyBottleneck / aux_loss / update() live on CompressionModel but are not used
    # by forward(); they are not implemented here.
    return {'g_s': g_s}


# --------------------------------- forward -----------------------------------

def factorized_prior_decoder_forward(x, params):
    """x is a sequence; as in the PyTorch module, only x[1] (the latent, NCHW) is used."""
    y = x[1]
    t = jnp.transpose(y, (0, 2, 3, 1)).astype(jnp.bfloat16)   # NHWC, bf16 activations (f32 accum)
    gs = params['g_s']
    t = deconv3s1(t, gs[0]['w'], gs[0]['b'], gdn=gs[1])                      # M -> N
    t = deconv3s1(t, gs[2]['w'], gs[2]['b'], gdn=gs[3])                      # M(=N) -> N
    t = deconv5s2(t, gs[4]['w'], gs[4]['b'], gdn=gs[5])                      # N -> N, x2 upsample
    x_hat = deconv5s2(t, gs[6]['w'], gs[6]['b'], gdn=None,
                      out_dtype=jnp.float32)                                 # N -> 3, x2 upsample
    return {'x_hat': jnp.transpose(x_hat, (0, 3, 1, 2))}                     # NCHW, like PyTorch


if __name__ == "__main__":
    key = jax.random.PRNGKey(0)
    k_img, k_lat, k_p = jax.random.split(key, 3)
    N = M = 32
    B, h, w = 2, 8, 8
    params = init_params(k_p, N, M)

    # forward(x) uses x[1]; x[0] is carried along unused, mirroring the PyTorch call signature.
    x0 = jax.random.uniform(k_img, (B, 3, 4 * h, 4 * w), jnp.float32)
    y_lat = jax.random.normal(k_lat, (B, M, h, w), jnp.float32)

    fwd = jax.jit(lambda a, b: factorized_prior_decoder_forward((a, b), params))
    out = fwd(x0, y_lat)
    jax.block_until_ready(out)

    assert out['x_hat'].shape == (B, 3, 4 * h, 4 * w)
    assert bool(jnp.all(jnp.isfinite(out['x_hat'])))
    print("KERNEL_OK")
</pallas_src>

<mosaic_0001>
module attributes {stable_mosaic.version = 11 : i64} {
  func.func @_gemm_bias_gdn_kernel(%arg0: i32, %arg1: memref<128x288xbf16, #tpu.memory_space<vmem>>, %arg2: memref<288x128xbf16, #tpu.memory_space<vmem>>, %arg3: memref<1x128xf32, #tpu.memory_space<vmem>>, %arg4: memref<128x128xf32, #tpu.memory_space<vmem>>, %arg5: memref<1x128xf32, #tpu.memory_space<vmem>>, %arg6: memref<128x128xbf16, #tpu.memory_space<vmem>>) attributes {dimension_semantics = [#tpu.dimension_semantics<parallel>], iteration_bounds = array<i64: 1>, scalar_prefetch = 0 : i64, scratch_operands = 0 : i64, tpu.core_type = #tpu.core_type<tc>, window_params = [{transform_indices = @transform_0, window_bounds = array<i64: 128, 288>}, {pipeline_mode = #tpu.pipeline_mode<synchronous>, transform_indices = @transform_1, window_bounds = array<i64: 288, 128>}, {pipeline_mode = #tpu.pipeline_mode<synchronous>, transform_indices = @transform_2, window_bounds = array<i64: 1, 128>}, {pipeline_mode = #tpu.pipeline_mode<synchronous>, transform_indices = @transform_3, window_bounds = array<i64: 128, 128>}, {pipeline_mode = #tpu.pipeline_mode<synchronous>, transform_indices = @transform_4, window_bounds = array<i64: 1, 128>}, {transform_indices = @transform_5, window_bounds = array<i64: 128, 128>}]} {
    %c0 = arith.constant 0 : index
    %c0_0 = arith.constant 0 : index
    %0 = vector.load %arg1[%c0, %c0_0] : memref<128x288xbf16, #tpu.memory_space<vmem>>, vector<128x288xbf16>
    %c0_1 = arith.constant 0 : index
    %c0_2 = arith.constant 0 : index
    %1 = vector.load %arg2[%c0_1, %c0_2] : memref<288x128xbf16, #tpu.memory_space<vmem>>, vector<288x128xbf16>
    %cst = arith.constant dense<0.000000e+00> : vector<128x128xf32>
    %2 = tpu.matmul %0, %1, %cst {dimension_numbers = #tpu.dot_dimension_numbers<[1], [0], [0], [1], [0, 0, 1, 1], [], []>} : vector<128x288xbf16>, vector<288x128xbf16>, vector<128x128xf32> -> vector<128x128xf32>
    %c0_3 = arith.constant 0 : index
    %c0_4 = arith.constant 0 : index
    %3 = vector.load %arg3[%c0_3, %c0_4] : memref<1x128xf32, #tpu.memory_space<vmem>>, vector<1x128xf32>
    %4 = vector.broadcast %3 : vector<1x128xf32> to vector<128x128xf32>
    %5 = arith.addf %2, %4 : vector<128x128xf32>
    %6 = arith.mulf %5, %5 : vector<128x128xf32>
    %c0_5 = arith.constant 0 : index
    %c0_6 = arith.constant 0 : index
    %7 = vector.load %arg4[%c0_5, %c0_6] : memref<128x128xf32, #tpu.memory_space<vmem>>, vector<128x128xf32>
    %cst_7 = arith.constant dense<0.000000e+00> : vector<128x128xf32>
    %8 = tpu.matmul %6, %7, %cst_7 {dimension_numbers = #tpu.dot_dimension_numbers<[1], [0], [0], [1], [0, 0, 1, 1], [], []>} : vector<128x128xf32>, vector<128x128xf32>, vector<128x128xf32> -> vector<128x128xf32>
    %c0_8 = arith.constant 0 : index
    %c0_9 = arith.constant 0 : index
    %9 = vector.load %arg5[%c0_8, %c0_9] : memref<1x128xf32, #tpu.memory_space<vmem>>, vector<1x128xf32>
    %10 = vector.broadcast %9 : vector<1x128xf32> to vector<128x128xf32>
    %11 = arith.addf %8, %10 : vector<128x128xf32>
    %12 = math.sqrt %11 : vector<128x128xf32>
    %13 = arith.mulf %5, %12 : vector<128x128xf32>
    %14 = arith.truncf %13 : vector<128x128xf32> to vector<128x128xbf16>
    %c0_10 = arith.constant 0 : index
    %c0_11 = arith.constant 0 : index
    %15 = vector.load %arg6[%c0_10, %c0_11] : memref<128x128xbf16, #tpu.memory_space<vmem>>, vector<128x128xbf16>
    tpu.vector_store %arg6[%c0_10, %c0_11], %14 {strides = array<i32>} : memref<128x128xbf16, #tpu.memory_space<vmem>>, vector<128x128xbf16>,
    return
  }
  func.func @transform_0(%arg0: i32) -> (i32, i32) {
    %c0_i32 = arith.constant 0 : i32
    %c0_i32_0 = arith.constant 0 : i32
    return %arg0, %c0_i32 : i32, i32
  }
  func.func @transform_1(%arg0: i32) -> (i32, i32) {
    %c0_i32 = arith.constant 0 : i32
    %c0_i32_0 = arith.constant 0 : i32
    %c0_i32_1 = arith.constant 0 : i32
    return %c0_i32, %c0_i32_0 : i32, i32
  }
  func.func @transform_2(%arg0: i32) -> (i32, i32) {
    %c0_i32 = arith.constant 0 : i32
    %c0_i32_0 = arith.constant 0 : i32
    %c0_i32_1 = arith.constant 0 : i32
    return %c0_i32, %c0_i32_0 : i32, i32
  }
  func.func @transform_3(%arg0: i32) -> (i32, i32) {
    %c0_i32 = arith.constant 0 : i32
    %c0_i32_0 = arith.constant 0 : i32
    %c0_i32_1 = arith.constant 0 : i32
    return %c0_i32, %c0_i32_0 : i32, i32
  }
  func.func @transform_4(%arg0: i32) -> (i32, i32) {
    %c0_i32 = arith.constant 0 : i32
    %c0_i32_0 = arith.constant 0 : i32
    %c0_i32_1 = arith.constant 0 : i32
    return %c0_i32, %c0_i32_0 : i32, i32
  }
  func.func @transform_5(%arg0: i32) -> (i32, i32) {
    %c0_i32 = arith.constant 0 : i32
    %c0_i32_0 = arith.constant 0 : i32
    return %arg0, %c0_i32 : i32, i32
  }
}

module attributes {stable_mosaic.version = 11 : i64} {
  func.func @_gemm_bias_gdn_kernel(%arg0: i32, %arg1: memref<128x288xbf16, #tpu.memory_space<vmem>>, %arg2: memref<288x32xbf16, #tpu.memory_space<vmem>>, %arg3: memref<1x32xf32, #tpu.memory_space<vmem>>, %arg4: memref<32x32xf32, #tpu.memory_space<vmem>>, %arg5: memref<1x32xf32, #tpu.memory_space<vmem>>, %arg6: memref<128x32xbf16, #tpu.memory_space<vmem>>) attributes {dimension_semantics = [#tpu.dimension_semantics<parallel>], iteration_bounds = array<i64: 1>, scalar_prefetch = 0 : i64, scratch_operands = 0 : i64, tpu.core_type = #tpu.core_type<tc>, window_params = [{transform_indices = @transform_0, window_bounds = array<i64: 128, 288>}, {pipeline_mode = #tpu.pipeline_mode<synchronous>, transform_indices = @transform_1, window_bounds = array<i64: 288, 32>}, {pipeline_mode = #tpu.pipeline_mode<synchronous>, transform_indices = @transform_2, window_bounds = array<i64: 1, 32>}, {pipeline_mode = #tpu.pipeline_mode<synchronous>, transform_indices = @transform_3, window_bounds = array<i64: 32, 32>}, {pipeline_mode = #tpu.pipeline_mode<synchronous>, transform_indices = @transform_4, window_bounds = array<i64: 1, 32>}, {transform_indices = @transform_5, window_bounds = array<i64: 128, 32>}]} {
    %c0 = arith.constant 0 : index
    %c0_0 = arith.constant 0 : index
    %0 = vector.load %arg1[%c0, %c0_0] : memref<128x288xbf16, #tpu.memory_space<vmem>>, vector<128x288xbf16>
    %c0_1 = arith.constant 0 : index
    %c0_2 = arith.constant 0 : index
    %1 = vector.load %arg2[%c0_1, %c0_2] : memref<288x32xbf16, #tpu.memory_space<vmem>>, vector<288x32xbf16>
    %cst = arith.constant dense<0.000000e+00> : vector<128x32xf32>
    %2 = tpu.matmul %0, %1, %cst {dimension_numbers = #tpu.dot_dimension_numbers<[1], [0], [0], [1], [0, 0, 1, 1], [], []>} : vector<128x288xbf16>, vector<288x32xbf16>, vector<128x32xf32> -> vector<128x32xf32>
    %c0_3 = arith.constant 0 : index
    %c0_4 = arith.constant 0 : index
    %3 = vector.load %arg3[%c0_3, %c0_4] : memref<1x32xf32, #tpu.memory_space<vmem>>, vector<1x32xf32>
    %4 = vector.broadcast %3 : vector<1x32xf32> to vector<128x32xf32>
    %5 = arith.addf %2, %4 : vector<128x32xf32>
    %6 = arith.mulf %5, %5 : vector<128x32xf32>
    %c0_5 = arith.constant 0 : index
    %c0_6 = arith.constant 0 : index
    %7 = vector.load %arg4[%c0_5, %c0_6] : memref<32x32xf32, #tpu.memory_space<vmem>>, vector<32x32xf32>
    %cst_7 = arith.constant dense<0.000000e+00> : vector<128x32xf32>
    %8 = tpu.matmul %6, %7, %cst_7 {dimension_numbers = #tpu.dot_dimension_numbers<[1], [0], [0], [1], [0, 0, 1, 1], [], []>} : vector<128x32xf32>, vector<32x32xf32>, vector<128x32xf32> -> vector<128x32xf32>
    %c0_8 = arith.constant 0 : index
    %c0_9 = arith.constant 0 : index
    %9 = vector.load %arg5[%c0_8, %c0_9] : memref<1x32xf32, #tpu.memory_space<vmem>>, vector<1x32xf32>
    %10 = vector.broadcast %9 : vector<1x32xf32> to vector<128x32xf32>
    %11 = arith.addf %8, %10 : vector<128x32xf32>
    %12 = math.sqrt %11 : vector<128x32xf32>
    %13 = arith.mulf %5, %12 : vector<128x32xf32>
    %14 = arith.truncf %13 : vector<128x32xf32> to vector<128x32xbf16>
    %c0_10 = arith.constant 0 : index
    %c0_11 = arith.constant 0 : index
    %15 = vector.load %arg6[%c0_10, %c0_11] : memref<128x32xbf16, #tpu.memory_space<vmem>>, vector<128x32xbf16>
    tpu.vector_store %arg6[%c0_10, %c0_11], %14 {strides = array<i32>} : memref<128x32xbf16, #tpu.memory_space<vmem>>, vector<128x32xbf16>,
    return
  }
  func.func @transform_0(%arg0: i32) -> (i32, i32) {
    %c0_i32 = arith.constant 0 : i32
    %c0_i32_0 = arith.constant 0 : i32
    return %arg0, %c0_i32 : i32, i32
  }
  func.func @transform_1(%arg0: i32) -> (i32, i32) {
    %c0_i32 = arith.constant 0 : i32
    %c0_i32_0 = arith.constant 0 : i32
    %c0_i32_1 = arith.constant 0 : i32
    return %c0_i32, %c0_i32_0 : i32, i32
  }
  func.func @transform_2(%arg0: i32) -> (i32, i32) {
    %c0_i32 = arith.constant 0 : i32
    %c0_i32_0 = arith.constant 0 : i32
    %c0_i32_1 = arith.constant 0 : i32
    return %c0_i32, %c0_i32_0 : i32, i32
  }
  func.func @transform_3(%arg0: i32) -> (i32, i32) {
    %c0_i32 = arith.constant 0 : i32
    %c0_i32_0 = arith.constant 0 : i32
    %c0_i32_1 = arith.constant 0 : i32
    return %c0_i32, %c0_i32_0 : i32, i32
  }
  func.func @transform_4(%arg0: i32) -> (i32, i32) {
    %c0_i32 = arith.constant 0 : i32
    %c0_i32_0 = arith.constant 0 : i32
    %c0_i32_1 = arith.constant 0 : i32
    return %c0_i32, %c0_i32_0 : i32, i32
  }
  func.func @transform_5(%arg0: i32) -> (i32, i32) {
    %c0_i32 = arith.constant 0 : i32
    %c0_i32_0 = arith.constant 0 : i32
    return %arg0, %c0_i32 : i32, i32
  }
}

module attributes {stable_mosaic.version = 11 : i64} {
  func.func @_gemm_bias_kernel(%arg0: i32, %arg1: memref<512x288xbf16, #tpu.memory_space<vmem>>, %arg2: memref<288x32xbf16, #tpu.memory_space<vmem>>, %arg3: memref<1x32xf32, #tpu.memory_space<vmem>>, %arg4: memref<512x32xf32, #tpu.memory_space<vmem>>) attributes {dimension_semantics = [#tpu.dimension_semantics<parallel>], iteration_bounds = array<i64: 1>, scalar_prefetch = 0 : i64, scratch_operands = 0 : i64, tpu.core_type = #tpu.core_type<tc>, window_params = [{transform_indices = @transform_0, window_bounds = array<i64: 512, 288>}, {pipeline_mode = #tpu.pipeline_mode<synchronous>, transform_indices = @transform_1, window_bounds = array<i64: 288, 32>}, {pipeline_mode = #tpu.pipeline_mode<synchronous>, transform_indices = @transform_2, window_bounds = array<i64: 1, 32>}, {transform_indices = @transform_3, window_bounds = array<i64: 512, 32>}]} {
    %c0 = arith.constant 0 : index
    %c0_0 = arith.constant 0 : index
    %0 = vector.load %arg1[%c0, %c0_0] : memref<512x288xbf16, #tpu.memory_space<vmem>>, vector<512x288xbf16>
    %c0_1 = arith.constant 0 : index
    %c0_2 = arith.constant 0 : index
    %1 = vector.load %arg2[%c0_1, %c0_2] : memref<288x32xbf16, #tpu.memory_space<vmem>>, vector<288x32xbf16>
    %cst = arith.constant dense<0.000000e+00> : vector<512x32xf32>
    %2 = tpu.matmul %0, %1, %cst {dimension_numbers = #tpu.dot_dimension_numbers<[1], [0], [0], [1], [0, 0, 1, 1], [], []>} : vector<512x288xbf16>, vector<288x32xbf16>, vector<512x32xf32> -> vector<512x32xf32>
    %c0_3 = arith.constant 0 : index
    %c0_4 = arith.constant 0 : index
    %3 = vector.load %arg3[%c0_3, %c0_4] : memref<1x32xf32, #tpu.memory_space<vmem>>, vector<1x32xf32>
    %4 = vector.broadcast %3 : vector<1x32xf32> to vector<512x32xf32>
    %5 = arith.addf %2, %4 : vector<512x32xf32>
    %c0_5 = arith.constant 0 : index
    %c0_6 = arith.constant 0 : index
    %6 = vector.load %arg4[%c0_5, %c0_6] : memref<512x32xf32, #tpu.memory_space<vmem>>, vector<512x32xf32>
    tpu.vector_store %arg4[%c0_5, %c0_6], %5 {strides = array<i32>} : memref<512x32xf32, #tpu.memory_space<vmem>>, vector<512x32xf32>,
    return
  }
  func.func @transform_0(%arg0: i32) -> (i32, i32) {
    %c0_i32 = arith.constant 0 : i32
    %c0_i32_0 = arith.constant 0 : i32
    return %arg0, %c0_i32 : i32, i32
  }
  func.func @transform_1(%arg0: i32) -> (i32, i32) {
    %c0_i32 = arith.constant 0 : i32
    %c0_i32_0 = arith.constant 0 : i32
    %c0_i32_1 = arith.constant 0 : i32
    return %c0_i32, %c0_i32_0 : i32, i32
  }
  func.func @transform_2(%arg0: i32) -> (i32, i32) {
    %c0_i32 = arith.constant 0 : i32
    %c0_i32_0 = arith.constant 0 : i32
    %c0_i32_1 = arith.constant 0 : i32
    return %c0_i32, %c0_i32_0 : i32, i32
  }
  func.func @transform_3(%arg0: i32) -> (i32, i32) {
    %c0_i32 = arith.constant 0 : i32
    %c0_i32_0 = arith.constant 0 : i32
    return %arg0, %c0_i32 : i32, i32
  }
}

</mosaic_0001>

<bundles_post_ra>
// kernel: tile.28
= control target key start
LH: loop header
LB: loop body
LE: loop exit
PB: predicated region body
PF: predicated region fallthrough
CT: control target
= control target key end

     0   :  { %s22_s0 = inlined_call_operand.vmem [shape: f32[8], index: 0, kind: input, shape index: {}]   ;;  %s23_s1 = inlined_call_operand.vmem [shape: f32[4,8], index: 1, kind: output, shape index: {}]  }
   0x1   :  { %v4_v0 = vld [vmem:[%s22_s0] ss:$0 sm:$0xff] }
   0x2   :  { %5 = vst [vmem:[%s23_s1] sm:$0xf] %v4_v0 }

// kernel: tile.29
= control target key start
LH: loop header
LB: loop body
LE: loop exit
PB: predicated region body
PF: predicated region fallthrough
CT: control target
= control target key end

     0   :  { %vm8_vm0 = vcmask 64512   ;;  %s40_s8 = smov 8   ;;  %s41_s9 = smov 16   ;;  %vm14_vm1 = vcmask 261312   ;;  %vm20_vm2 = vcmask 195712   ;;  %vm26_vm3 = vcmask 130112   ;;  %s58_s0 = inlined_call_operand.vmem [shape: f32[4,8], index: 0, kind: input, shape index: {}]   ;;  %s59_s1 = inlined_call_operand.vmem [shape: f32[1,32], index: 1, kind: output, shape index: {}]  }
   0x1   :  { %v5_v0 = vld [vmem:[%s58_s0] sm:$0xf]  ;;  %s39_s0 = smov 24  }
   0x2   :  { %6 = vst [vmem:[#allocation1] sm:$0xf] %v5_v0 }
   0x9   :  { %v11_v1 = vld [vmem:[#allocation1 + $0x3] sm:$0x1]   ;;  %v23_v2 = vld [vmem:[#allocation1 + $0x1] sm:$0x1]   ;;  %v7_v3 = vld [vmem:[#allocation1] sm:$0x1]  }
   0xa   :  { %12 = vrot.lane.b32.xlu0 %v11_v1, %s39_s0  ;;  %24 = vrot.lane.b32.xlu1 %v23_v2, %s40_s8  ;;  %v17_v4 = vld [vmem:[#allocation1 + $0x2] sm:$0x1]   ;;  %9 = vst.msk [vmem:[#allocation0] sm:$0x1] %vm8_vm0, %v7_v3  }
   0xe   :  { %18 = vrot.lane.b32.xlu0 %v17_v4, %s41_s9 }
  0x7c   :  { %v13_v5 = vpop.permute.xlu0 %12   ;;  %v25_v6 = vpop.permute.xlu1 %24  }
  0x7d   :  { %15 = vst.msk [vmem:[#allocation0] sm:$0x1] %vm14_vm1, %v13_v5  }
  0x80   :  { %v19_v7 = vpop.permute.xlu0 %18  }
  0x81   :  { %21 = vst.msk [vmem:[#allocation0] sm:$0x1] %vm20_vm2, %v19_v7  }
  0x82   :  { %27 = vst.msk [vmem:[#allocation0] sm:$0x1] %vm26_vm3, %v25_v6  }
  0x89   :  { %v32_v8 = vld [vmem:[#allocation0] sm:$0x1] }
  0x8a   :  { %35 = vst [vmem:[%s59_s1] sm:$0x1] %v32_v8 }

// kernel: tile.22
= control target key start
LH: loop header
LB: loop body
LE: loop exit
PB: predicated region body
PF: predicated region fallthrough
CT: control target
= control target key end

     0   :  { %s22_s0 = inlined_call_operand.vmem [shape: f32[32], index: 0, kind: input, shape index: {}]   ;;  %s23_s1 = inlined_call_operand.vmem [shape: f32[4,32], index: 1, kind: output, shape index: {}]  }
   0x1   :  { %v4_v0 = vld [vmem:[%s22_s0] ss:$0 sm:$0xff] }
   0x2   :  { %5 = vst [vmem:[%s23_s1] sm:$0xf] %v4_v0 }

// kernel: tile.24
= control target key start
LH: loop header
LB: loop body
LE: loop exit
PB: predicated region body
PF: predicated region fallthrough
CT: control target
= control target key end

     0   :  { %vm8_vm0 = vcmask 261120   ;;  %s40_s8 = smov 32   ;;  %s41_s9 = smov 64   ;;  %vm14_vm1 = vcmask 1048320   ;;  %vm20_vm2 = vcmask 785920   ;;  %vm26_vm3 = vcmask 523520   ;;  %s58_s0 = inlined_call_operand.vmem [shape: f32[4,32], index: 0, kind: input, shape index: {}]   ;;  %s59_s1 = inlined_call_operand.vmem [shape: f32[1,128], index: 1, kind: output, shape index: {}]  }
   0x1   :  { %v5_v0 = vld [vmem:[%s58_s0] sm:$0xf]  ;;  %s39_s0 = smov 96  }
   0x2   :  { %6 = vst [vmem:[#allocation1] sm:$0xf] %v5_v0 }
   0x9   :  { %v11_v1 = vld [vmem:[#allocation1 + $0x3] sm:$0x1]   ;;  %v23_v2 = vld [vmem:[#allocation1 + $0x1] sm:$0x1]   ;;  %v7_v3 = vld [vmem:[#allocation1] sm:$0x1]  }
   0xa   :  { %12 = vrot.lane.b32.xlu0 %v11_v1, %s39_s0  ;;  %24 = vrot.lane.b32.xlu1 %v23_v2, %s40_s8  ;;  %v17_v4 = vld [vmem:[#allocation1 + $0x2] sm:$0x1]   ;;  %9 = vst.msk [vmem:[#allocation0] sm:$0x1] %vm8_vm0, %v7_v3  }
   0xe   :  { %18 = vrot.lane.b32.xlu0 %v17_v4, %s41_s9 }
  0x7c   :  { %v13_v5 = vpop.permute.xlu0 %12   ;;  %v25_v6 = vpop.permute.xlu1 %24  }
  0x7d   :  { %15 = vst.msk [vmem:[#allocation0] sm:$0x1] %vm14_vm1, %v13_v5  }
  0x80   :  { %v19_v7 = vpop.permute.xlu0 %18  }
  0x81   :  { %21 = vst.msk [vmem:[#allocation0] sm:$0x1] %vm20_vm2, %v19_v7  }
  0x82   :  { %27 = vst.msk [vmem:[#allocation0] sm:$0x1] %vm26_vm3, %v25_v6  }
  0x89   :  { %v32_v8 = vld [vmem:[#allocation0] sm:$0x1] }
  0x8a   :  { %35 = vst [vmem:[%s59_s1] sm:$0x1] %v32_v8 }

// kernel: _lambda_.4
= control target key start
LH: loop header
LB: loop body
LE: loop exit
PB: predicated region body
PF: predicated region fallthrough
CT: control target
= control target key end

     0   :  { %vm324_vm0 = vcmask 261120   ;;  %vm955_vm4 = vcmask 257024   ;;  %s1722_s1 = inlined_call_operand.vmem [shape: bf16[288,32], index: 1, kind: input, shape index: {}]   ;;  %s1723_s0 = inlined_call_operand.vmem [shape: bf16[128,288], index: 0, kind: input, shape index: {}]   ;;  %s1724_s3 = inlined_call_operand.vmem [shape: f32[32,32], index: 3, kind: input, shape index: {}]   ;;  %s1725_s2 = inlined_call_operand.vmem [shape: f32[1,32], index: 2, kind: input, shape index: {}]   ;;  %s1726_s4 = inlined_call_operand.vmem [shape: f32[1,32], index: 4, kind: input, shape index: {}]   ;;  %s1727_s5 = inlined_call_operand.vmem [shape: bf16[128,32], index: 5, kind: output, shape index: {}]  }
   0x1   :  { %v1222_v0 = vld [vmem:[%s1722_s1 + $0x78] sm:$0xff]   ;;  %v1224_v2 = vld [vmem:[%s1722_s1 + $0x70] sm:$0xff]   ;;  %v1226_v4 = vld [vmem:[%s1722_s1 + $0x68] sm:$0xff]  }
   0x2   :  { %v1223_v1 = vld [vmem:[%s1722_s1 + $0x38] sm:$0xff]   ;;  %1076 = vmatprep.subr.bf16.mxu0 %v1222_v0  ;;  %v1225_v3 = vld [vmem:[%s1722_s1 + $0x30] sm:$0xff]   ;;  %v1227_v5 = vld [vmem:[%s1722_s1 + $0x28] sm:$0xff]  }
   0x3   :  { %1077 = vmatpush3.bf16.msra.mxu0 %v1223_v1  ;;  %v1228_v6 = vld [vmem:[%s1722_s1 + $0x60] sm:$0xff]   ;;  %v1230_v8 = vld [vmem:[%s1722_s1 + $0x58] sm:$0xff]   ;;  %v1237_v10 = vld [vmem:[%s1722_s1 + $0x88] sm:$0xff]  }
   0x4   :  { %1078 = vmatprep.subr.bf16.mxu0 %v1224_v2  ;;  %v1229_v7 = vld [vmem:[%s1722_s1 + $0x20] sm:$0xff]   ;;  %v1231_v9 = vld [vmem:[%s1722_s1 + $0x18] sm:$0xff]   ;;  %v1232_v11 = vld [vmem:[%s1722_s1 + $0x50] sm:$0xff]   ;;  %1170 = vmatprep.subr.bf16.mxu1 %v1237_v10 }
   0x5   :  { %v1233_v12 = vld [vmem:[%s1722_s1 + $0x10] sm:$0xff]   ;;  %v1234_v13 = vld [vmem:[%s1722_s1 + $0x48] sm:$0xff]   ;;  %1171 = vmatpush3.bf16.msra.mxu1 %v1237_v10  ;;  %v1242_v15 = vld [vmem:[%s1722_s1 + $0x80] sm:$0xff]  }
   0x6   :  { %v1241_v14 = vld [vmem:[%s1723_s0 + $0x4] ss:$12 sps:$4 sm:$0xff]   ;;  %v1243_v16 = vld [vmem:[%s1723_s0 + $0x8] ss:$12 sps:$4 sm:$0xff]   ;;  %1172 = vmatprep.subr.bf16.mxu1 %v1242_v15  ;;  %v1244_v17 = vld [vmem:[%s1723_s0 + $0x20] ss:$12 sps:$4 sm:$0xff]  }
   0x7   :  { %1079 = vmatpush3.bf16.msra.mxu0 %v1225_v3  ;;  %381 = vmatprep.mubr.bf16.mxu0 %v1241_v14  ;;  %v1235_v18 = vld [vmem:[%s1722_s1 + $0x8] sm:$0xff]   ;;  %v1236_v19 = vld [vmem:[%s1722_s1 + $0x40] sm:$0xff]   ;;  %v1252_v23 = vld [vmem:[%s1723_s0 + $0x50] ss:$12 sps:$4 sm:$0xff]  }
   0x8   :  { %1080 = vmatprep.subr.bf16.mxu0 %v1226_v4  ;;  %1174 = vmatprep.mubr.msk.bf16.mxu1 %vm324_vm0, %v1243_v16  ;;  %v1251_v20 = vld [vmem:[%s1723_s0 + $0x38] ss:$12 sps:$4 sm:$0xff]   ;;  %v1239_v22 = vld [vmem:[%s1723_s0] ss:$12 sps:$4 sm:$0xff]   ;;  %v1259_v24 = vld [vmem:[%s1723_s0 + $0x68] ss:$12 sps:$4 sm:$0xff]  }
   0x9   :  { %1173 = vmatpush3.bf16.msra.mxu1 %v1242_v15  ;;  %v1238_v21 = vld [vmem:[%s1722_s1] sm:$0xff]   ;;  %v1245_v25 = vld [vmem:[%s1723_s0 + $0x1c] ss:$12 sps:$4 sm:$0xff]   ;;  %v1253_v32 = vld [vmem:[%s1723_s0 + $0x4c] ss:$12 sps:$4 sm:$0xff]  }
   0xa   :  { %v1260_v26 = vld [vmem:[%s1723_s0 + $0x80] ss:$12 sps:$4 sm:$0xff]   ;;  %v1247_v27 = vld [vmem:[%s1723_s0 + $0x18] ss:$12 sps:$4 sm:$0xff]   ;;  %v1268_v30 = vld [vmem:[%s1723_s0 + $0xb0] ss:$12 sps:$4 sm:$0xff]  }
   0xb   :  { %1081 = vmatpush3.bf16.msra.mxu0 %v1227_v5  ;;  %v1267_v28 = vld [vmem:[%s1723_s0 + $0x98] ss:$12 sps:$4 sm:$0xff]   ;;  %v1248_v29 = vld [vmem:[%s1723_s0 + $0x34] ss:$12 sps:$4 sm:$0xff]   ;;  %v1250_v31 = vld [vmem:[%s1723_s0 + $0x30] ss:$12 sps:$4 sm:$0xff]  }
   0xc   :  { %1082 = vmatprep.subr.bf16.mxu0 %v1228_v6  ;;  %1175 = vmatmul.mubr.msk.bf16.vlgmr.msra.gmra.mxu1 %vm324_vm0, %v1244_v17  ;;  %v1255_v33 = vld [vmem:[%s1723_s0 + $0x48] ss:$12 sps:$4 sm:$0xff]   ;;  %v1256_v34 = vld [vmem:[%s1723_s0 + $0x64] ss:$12 sps:$4 sm:$0xff]   ;;  %v1258_v35 = vld [vmem:[%s1723_s0 + $0x60] ss:$12 sps:$4 sm:$0xff]  }
   0xd   :  { %1178 = vmatprep.mubr.msk.bf16.mxu1 %vm324_vm0, %v1251_v20  ;;  %v1261_v36 = vld [vmem:[%s1723_s0 + $0x7c] ss:$12 sps:$4 sm:$0xff]   ;;  %v1263_v37 = vld [vmem:[%s1723_s0 + $0x78] ss:$12 sps:$4 sm:$0xff]   ;;  %v1264_v38 = vld [vmem:[%s1723_s0 + $0x94] ss:$12 sps:$4 sm:$0xff]  }
   0xe   :  { %v1266_v39 = vld [vmem:[%s1723_s0 + $0x90] ss:$12 sps:$4 sm:$0xff]   ;;  %v1269_v40 = vld [vmem:[%s1723_s0 + $0xac] ss:$12 sps:$4 sm:$0xff]   ;;  %v1271_v41 = vld [vmem:[%s1723_s0 + $0xa8] ss:$12 sps:$4 sm:$0xff]  }
   0xf   :  { %1083 = vmatpush3.bf16.msra.mxu0 %v1229_v7  ;;  %v562_v42 = vld [vmem:[%s1724_s3 + $0x18] sm:$0xff]  ;;  %v561_v43 = vld [vmem:[%s1724_s3 + $0x10] sm:$0xff]  ;;  %v560_v44 = vld [vmem:[%s1724_s3 + $0x8] sm:$0xff] }
  0x10   :  { %1084 = vmatprep.subr.bf16.mxu0 %v1230_v8  ;;  %1190 = vmatprep.subr.mxu1 %v562_v42  ;;  %v559_v45 = vld [vmem:[%s1724_s3] sm:$0xff] }
  0x11   :  { %1191 = vmatpush3.msra.mxu1 %v562_v42  ;;  %v1483_v50 = vld [vmem:[%s1725_s2] ss:$0 sm:$0xff] }
  0x12   :  { %1192 = vmatprep.subr.mxu1 %v561_v43 }
  0x13   :  { %1085 = vmatpush3.bf16.msra.mxu0 %v1231_v9  ;;  %1193 = vmatpush3.msra.mxu1 %v561_v43 }
  0x14   :  { %1086 = vmatprep.subr.bf16.mxu0 %v1232_v11  ;;  %1179 = vmatmul.mubr.msk.bf16.gmra.mxu1 %vm324_vm0, %v1252_v23 }
  0x15   :  { %1182 = vmatprep.mubr.msk.bf16.mxu1 %vm324_vm0, %v1259_v24  ;;  %1194 = vmatprep.subr.mxu1 %v560_v44 }
  0x16   :  { %1195 = vmatpush3.msra.mxu1 %v560_v44 }
  0x17   :  { %1087 = vmatpush3.bf16.msra.mxu0 %v1233_v12  ;;  %1196 = vmatprep.subr.mxu1 %v559_v45 }
  0x18   :  { %1088 = vmatprep.subr.bf16.mxu0 %v1234_v13  ;;  %1197 = vmatpush3.msra.mxu1 %v559_v45 }
  0x1b   :  { %1089 = vmatpush3.bf16.msra.mxu0 %v1235_v18 }
  0x1c   :  { %1090 = vmatprep.subr.bf16.mxu0 %v1236_v19  ;;  %1183 = vmatmul.mubr.msk.bf16.gmra.mxu1 %vm324_vm0, %v1260_v26 }
  0x1d   :  { %1186 = vmatprep.mubr.msk.bf16.mxu1 %vm324_vm0, %v1267_v28 }
  0x1f   :  { %1091 = vmatpush3.bf16.msra.mxu0 %v1238_v21 }
  0x22   :  { %382 = vmatmul.mubr.bf16.vlgmr.msra.gmra.mxu0 %v1239_v22 }
  0x23   :  { %389 = vmatprep.mubr.bf16.mxu0 %v1245_v25 }
  0x24   :  { %1187 = vmatmul.mubr.msk.bf16.gmra.mxu1 %vm324_vm0, %v1268_v30 }
  0x2a   :  { %390 = vmatmul.mubr.bf16.gmra.mxu0 %v1247_v27 }
  0x2b   :  { %397 = vmatprep.mubr.bf16.mxu0 %v1248_v29 }
  0x32   :  { %398 = vmatmul.mubr.bf16.gmra.mxu0 %v1250_v31 }
  0x33   :  { %405 = vmatprep.mubr.bf16.mxu0 %v1253_v32 }
  0x3a   :  { %406 = vmatmul.mubr.bf16.gmra.mxu0 %v1255_v33 }
  0x3b   :  { %413 = vmatprep.mubr.bf16.mxu0 %v1256_v34 }
  0x42   :  { %414 = vmatmul.mubr.bf16.gmra.mxu0 %v1258_v35 }
  0x43   :  { %421 = vmatprep.mubr.bf16.mxu0 %v1261_v36 }
  0x4a   :  { %422 = vmatmul.mubr.bf16.gmra.mxu0 %v1263_v37 }
  0x4b   :  { %429 = vmatprep.mubr.bf16.mxu0 %v1264_v38 }
  0x52   :  { %430 = vmatmul.mubr.bf16.gmra.mxu0 %v1266_v39 }
  0x53   :  { %437 = vmatprep.mubr.bf16.mxu0 %v1269_v40 }
  0x5a   :  { %438 = vmatmul.mubr.bf16.gmra.mxu0 %v1271_v41 }
  0xcc   :  { %v1176_v46 = vpop.f32.mrf.mxu1 }
  0xce   :  { %v480_v48 = vpop.f32.mrf.mxu1 }
  0xd0   :  { %v1177_v53 = vpop.f32.mrf.mxu1 }
  0xd2   :  { %v483_v59 = vpop.f32.mrf.mxu1 }
  0xd4   :  { %v1180_v2 = vpop.f32.mrf.mxu1 }
  0xd6   :  { %v496_v9 = vpop.f32.mrf.mxu1 }
  0xd8   :  { %v1181_v16 = vpop.f32.mrf.mxu1 }
  0xda   :  { %v499_v23 = vpop.f32.mrf.mxu1 }
  0xdc   :  { %v1184_v30 = vpop.f32.mrf.mxu1 }
  0xde   :  { %v512_v37 = vpop.f32.mrf.mxu1 }
  0xe0   :  { %v1185_v44 = vpop.f32.mrf.mxu1 }
  0xe2   :  { %v1092_v47 = vpop.f32.mrf.mxu0 }
  0xe4   :  { %v1093_v49 = vpop.f32.mrf.mxu0 }
  0xe5   :  { %v1094_v51 = vadd.f32 %v1093_v49, %v1092_v47 }
  0xe6   :  { %v1095_v52 = vpop.f32.mrf.mxu0 }
  0xe7   :  { %v384_v54 = vadd.f32 %v1094_v51, %v1483_v50 }
  0xe8   :  { %v1096_v55 = vpop.f32.mrf.mxu0 }
  0xe9   :  { %v1097_v56 = vadd.f32 %v1096_v55, %v1095_v52  ;;  %v1486_v57 = vadd.f32 %v480_v48, %v384_v54  ;;  %v515_v52 = vpop.f32.mrf.mxu1 }
  0xea   :  { %v1098_v58 = vpop.f32.mrf.mxu0 }
  0xeb   :  { %v543_v60 = vmul.f32 %v1486_v57, %v1486_v57  ;;  %v387_v61 = vadd.f32 %v1097_v56, %v1483_v50 }
  0xec   :  { %v1099_v62 = vpop.f32.mrf.mxu0 }
  0xed   :  { %v1100_v63 = vadd.f32 %v1099_v62, %v1098_v58  ;;  %v1491_v0 = vadd.f32 %v483_v59, %v387_v61  ;;  %1198 = vmatprep.mubr.msk.f32.mxu1 %vm324_vm0, %v543_v60 }
  0xee   :  { %v1101_v1 = vpop.f32.mrf.mxu0 }
  0xef   :  { %v392_v3 = vadd.f32 %v1100_v63, %v1483_v50  ;;  %v544_v4 = vmul.f32 %v1491_v0, %v1491_v0  ;;  %v1188_v63 = vpop.f32.mrf.mxu1 }
  0xf0   :  { %v1102_v5 = vpop.f32.mrf.mxu0 }
  0xf1   :  { %v1497_v6 = vadd.f32 %v1176_v46, %v392_v3  ;;  %v1103_v7 = vadd.f32 %v1102_v5, %v1101_v1  ;;  %1199 = vmatmul.mubr.msk.f32.vlgmr.msra.gmra.mxu1 %vm324_vm0, %v544_v4 }
  0xf2   :  { %v1104_v8 = vpop.f32.mrf.mxu0 }
  0xf3   :  { %v545_v10 = vmul.f32 %v1497_v6, %v1497_v6  ;;  %v395_v11 = vadd.f32 %v1103_v7, %v1483_v50 }
  0xf4   :  { %v1105_v12 = vpop.f32.mrf.mxu0 }
  0xf5   :  { %v1503_v13 = vadd.f32 %v1177_v53, %v395_v11  ;;  %v1106_v14 = vadd.f32 %v1105_v12, %v1104_v8  ;;  %1201 = vmatprep.mubr.msk.f32.mxu1 %vm324_vm0, %v545_v10  ;;  %v528_v8 = vpop.f32.mrf.mxu1 }
  0xf6   :  { %v1107_v15 = vpop.f32.mrf.mxu0 }
  0xf7   :  { %v546_v17 = vmul.f32 %v1503_v13, %v1503_v13  ;;  %v400_v18 = vadd.f32 %v1106_v14, %v1483_v50 }
  0xf8   :  { %v1108_v19 = vpop.f32.mrf.mxu0 }
  0xf9   :  { %v1109_v20 = vadd.f32 %v1108_v19, %v1107_v15  ;;  %v1509_v21 = vadd.f32 %v496_v9, %v400_v18  ;;  %1202 = vmatmul.mubr.msk.f32.gmra.mxu1 %vm324_vm0, %v546_v17 }
  0xfa   :  { %v1110_v22 = vpop.f32.mrf.mxu0 }
  0xfb   :  { %v547_v24 = vmul.f32 %v1509_v21, %v1509_v21  ;;  %v403_v25 = vadd.f32 %v1109_v20, %v1483_v50 }
  0xfc   :  { %v1111_v26 = vpop.f32.mrf.mxu0 }
  0xfd   :  { %v1112_v27 = vadd.f32 %v1111_v26, %v1110_v22  ;;  %v1515_v28 = vadd.f32 %v499_v23, %v403_v25  ;;  %1204 = vmatprep.mubr.msk.f32.mxu1 %vm324_vm0, %v547_v24 }
  0xfe   :  { %v1113_v29 = vpop.f32.mrf.mxu0 }
  0xff   :  { %v408_v31 = vadd.f32 %v1112_v27, %v1483_v50  ;;  %v548_v32 = vmul.f32 %v1515_v28, %v1515_v28 }
 0x100   :  { %v1114_v33 = vpop.f32.mrf.mxu0 }
 0x101   :  { %v1521_v34 = vadd.f32 %v1180_v2, %v408_v31  ;;  %v1115_v35 = vadd.f32 %v1114_v33, %v1113_v29  ;;  %1205 = vmatmul.mubr.msk.f32.gmra.mxu1 %vm324_vm0, %v548_v32 }
 0x102   :  { %v1116_v36 = vpop.f32.mrf.mxu0 }
 0x103   :  { %v549_v38 = vmul.f32 %v1521_v34, %v1521_v34  ;;  %v411_v39 = vadd.f32 %v1115_v35, %v1483_v50 }
 0x104   :  { %v1117_v40 = vpop.f32.mrf.mxu0 }
 0x105   :  { %v1527_v41 = vadd.f32 %v1181_v16, %v411_v39  ;;  %v1118_v42 = vadd.f32 %v1117_v40, %v1116_v36  ;;  %1207 = vmatprep.mubr.msk.f32.mxu1 %vm324_vm0, %v549_v38  ;;  %v1189_v16 = vpop.f32.mrf.mxu1  ;;  %v1584_v39 = vld [vmem:[%s1726_s4] ss:$0 sm:$0xff] }
 0x106   :  { %v1119_v43 = vpop.f32.mrf.mxu0 }
 0x107   :  { %v550_v45 = vmul.f32 %v1527_v41, %v1527_v41  ;;  %v416_v46 = vadd.f32 %v1118_v42, %v1483_v50  ;;  %v531_v23 = vpop.f32.mrf.mxu1 }
 0x108   :  { %v1120_v47 = vpop.f32.mrf.mxu0 }
 0x109   :  { %v1121_v48 = vadd.f32 %v1120_v47, %v1119_v43  ;;  %v1533_v49 = vadd.f32 %v512_v37, %v416_v46  ;;  %1208 = vmatmul.mubr.msk.f32.gmra.mxu1 %vm324_vm0, %v550_v45 }
 0x10a   :  { %v1122_v51 = vpop.f32.mrf.mxu0 }
 0x10b   :  { %v551_v53 = vmul.f32 %v1533_v49, %v1533_v49  ;;  %v419_v54 = vadd.f32 %v1121_v48, %v1483_v50 }
 0x10c   :  { %v1123_v55 = vpop.f32.mrf.mxu0 }
 0x10d   :  { %v1124_v56 = vadd.f32 %v1123_v55, %v1122_v51  ;;  %v1539_v58 = vadd.f32 %v515_v52, %v419_v54  ;;  %1210 = vmatprep.mubr.msk.f32.mxu1 %vm324_vm0, %v551_v53 }
 0x10e   :  { %v1125_v59 = vpop.f32.mrf.mxu0 }
 0x10f   :  { %v424_v60 = vadd.f32 %v1124_v56, %v1483_v50  ;;  %v552_v61 = vmul.f32 %v1539_v58, %v1539_v58 }
 0x110   :  { %v1126_v62 = vpop.f32.mrf.mxu0 }
 0x111   :  { %v1545_v1 = vadd.f32 %v1184_v30, %v424_v60  ;;  %v1127_v2 = vadd.f32 %v1126_v62, %v1125_v59  ;;  %1211 = vmatmul.mubr.msk.f32.gmra.mxu1 %vm324_vm0, %v552_v61 }
 0x112   :  { %v1128_v3 = vpop.f32.mrf.mxu0 }
 0x113   :  { %v553_v4 = vmul.f32 %v1545_v1, %v1545_v1  ;;  %v427_v5 = vadd.f32 %v1127_v2, %v1483_v50 }
 0x114   :  { %v1129_v7 = vpop.f32.mrf.mxu0 }
 0x115   :  { %v1551_v9 = vadd.f32 %v1185_v44, %v427_v5  ;;  %v1130_v10 = vadd.f32 %v1129_v7, %v1128_v3  ;;  %1213 = vmatprep.mubr.msk.f32.mxu1 %vm324_vm0, %v553_v4 }
 0x116   :  { %v1131_v11 = vpop.f32.mrf.mxu0 }
 0x117   :  { %v554_v12 = vmul.f32 %v1551_v9, %v1551_v9  ;;  %v432_v14 = vadd.f32 %v1130_v10, %v1483_v50 }
 0x118   :  { %v1132_v15 = vpop.f32.mrf.mxu0 }
 0x119   :  { %v1557_v17 = vadd.f32 %v528_v8, %v432_v14  ;;  %v1133_v18 = vadd.f32 %v1132_v15, %v1131_v11  ;;  %1214 = vmatmul.mubr.msk.f32.gmra.mxu1 %vm324_vm0, %v554_v12 }
 0x11a   :  { %v1134_v19 = vpop.f32.mrf.mxu0 }
 0x11b   :  { %v555_v20 = vmul.f32 %v1557_v17, %v1557_v17  ;;  %v435_v22 = vadd.f32 %v1133_v18, %v1483_v50 }
 0x11c   :  { %v1135_v24 = vpop.f32.mrf.mxu0 }
 0x11d   :  { %v1563_v25 = vadd.f32 %v531_v23, %v435_v22  ;;  %v1136_v26 = vadd.f32 %v1135_v24, %v1134_v19  ;;  %1216 = vmatprep.mubr.msk.f32.mxu1 %vm324_vm0, %v555_v20 }
 0x11e   :  { %v1137_v27 = vpop.f32.mrf.mxu0 }
 0x11f   :  { %v556_v29 = vmul.f32 %v1563_v25, %v1563_v25  ;;  %v440_v30 = vadd.f32 %v1136_v26, %v1483_v50 }
 0x120   :  { %v1138_v31 = vpop.f32.mrf.mxu0 }
 0x121   :  { %v1569_v32 = vadd.f32 %v1188_v63, %v440_v30  ;;  %v1139_v33 = vadd.f32 %v1138_v31, %v1137_v27  ;;  %1217 = vmatmul.mubr.msk.f32.gmra.mxu1 %vm324_vm0, %v556_v29 }
 0x123   :  { %v557_v35 = vmul.f32 %v1569_v32, %v1569_v32  ;;  %v443_v36 = vadd.f32 %v1139_v33, %v1483_v50 }
 0x125   :  { %v1575_v37 = vadd.f32 %v1189_v16, %v443_v36  ;;  %1219 = vmatprep.mubr.msk.f32.mxu1 %vm324_vm0, %v557_v35 }
 0x127   :  { %v558_v38 = vmul.f32 %v1575_v37, %v1575_v37 }
 0x129   :  { %1220 = vmatmul.mubr.msk.f32.gmra.mxu1 %vm324_vm0, %v558_v38 }
 0x1b1   :  { %v1200_v40 = vpop.f32.mrf.mxu1 }
 0x1b2   :  { %v690_v42 = vadd.f32 %v1200_v40, %v1584_v39 }
 0x1b3   :  { %v684_v43 = vpop.f32.mrf.mxu1 }
 0x1b4   :  { %1272 = vrsqrt.f32 %v690_v42  ;;  %v685_v50 = vadd.f32 %v1584_v39, %v684_v43  ;;  %vm772_vm1 = vcmp.eq.f32.partialorder %v690_v42, inf  ;;  %v775_v54 = vand.u32 2147483648, %v690_v42 }
 0x1b5   :  { %vm774_vm2 = vcmp.eq.f32.partialorder %v690_v42, 0.0 }
 0x1b6   :  { %1274 = vrsqrt.f32 %v685_v50  ;;  %vm765_vm3 = vcmp.eq.f32.partialorder %v685_v50, inf  ;;  %v768_v2 = vand.u32 2147483648, %v685_v50  ;;  %vm767_vm5 = vcmp.eq.f32.partialorder %v685_v50, 0.0 }
 0x1b9   :  { %v1203_v44 = vpop.f32.mrf.mxu1 }
 0x1ba   :  { %v700_v45 = vadd.f32 %v1203_v44, %v1584_v39 }
 0x1bb   :  { %v694_v46 = vpop.f32.mrf.mxu1 }
 0x1bc   :  { %1276 = vrsqrt.f32 %v700_v45  ;;  %v695_v47 = vadd.f32 %v1584_v39, %v694_v46  ;;  %vm786_vm6 = vcmp.eq.f32.partialorder %v700_v45, inf  ;;  %v789_v14 = vand.u32 2147483648, %v700_v45 }
 0x1bd   :  { %vm788_vm7 = vcmp.eq.f32.partialorder %v700_v45, 0.0 }
 0x1be   :  { %1278 = vrsqrt.f32 %v695_v47  ;;  %vm779_vm8 = vcmp.eq.f32.partialorder %v695_v47, inf  ;;  %v782_v23 = vand.u32 2147483648, %v695_v47  ;;  %vm781_vm9 = vcmp.eq.f32.partialorder %v695_v47, 0.0 }
 0x1c1   :  { %v1273_v48 = vpop.eup %1272  ;;  %v1206_v51 = vpop.f32.mrf.mxu1 }
 0x1c2   :  { %v771_v52 = vmul.f32 %v1273_v48, %v690_v42  ;;  %v1591_v53 = vadd.f32 %v1206_v51, %v1584_v39 }
 0x1c3   :  { %v704_v55 = vpop.f32.mrf.mxu1  ;;  %v1275_v56 = vpop.eup %1274 }
 0x1c4   :  { %v773_v59 = vsel %vm772_vm1, %v690_v42, %v771_v52  ;;  %1280 = vrsqrt.f32 %v1591_v53  ;;  %v764_v61 = vmul.f32 %v1275_v56, %v685_v50  ;;  %v1595_v62 = vadd.f32 %v1584_v39, %v704_v55 }
 0x1c5   :  { %v776_v60 = vsel %vm774_vm2, %v775_v54, %v773_v59  ;;  %vm800_vm10 = vcmp.eq.f32.partialorder %v1591_v53, inf  ;;  %v803_v36 = vand.u32 2147483648, %v1591_v53  ;;  %vm802_vm11 = vcmp.eq.f32.partialorder %v1591_v53, 0.0 }
 0x1c6   :  { %v876_v63 = vmul.f32 %v776_v60, %v1491_v0  ;;  %v766_v3 = vsel %vm765_vm3, %v685_v50, %v764_v61  ;;  %1282 = vrsqrt.f32 %v1595_v62  ;;  %vm793_vm12 = vcmp.eq.f32.partialorder %v1595_v62, inf }
 0x1c7   :  { %v769_v5 = vsel %vm767_vm5, %v768_v2, %v766_v3  ;;  %vm795_vm13 = vcmp.eq.f32.partialorder %v1595_v62, 0.0 }
 0x1c8   :  { %v1061_v4 = vpack.c.bf16 %v876_v63, %v876_v63  ;;  %v875_v8 = vmul.f32 %v769_v5, %v1486_v57 }
 0x1c9   :  { %v1277_v7 = vpop.eup %1276  ;;  %v1209_v10 = vpop.f32.mrf.mxu1 }
 0x1ca   :  { %957 = vst.msk [vmem:[%s1727_s5 + $0x4] sm:$0xf] %vm955_vm4, %v1061_v4  ;;  %v785_v11 = vmul.f32 %v1277_v7, %v700_v45  ;;  %v1605_v0 = vadd.f32 %v1209_v10, %v1584_v39  ;;  %v1060_v12 = vpack.c.bf16 %v875_v8, %v875_v8 }
 0x1cb   :  { %v714_v15 = vpop.f32.mrf.mxu1  ;;  %v1279_v16 = vpop.eup %1278 }
 0x1cc   :  { %v787_v18 = vsel %vm786_vm6, %v700_v45, %v785_v11  ;;  %1284 = vrsqrt.f32 %v1605_v0  ;;  %956 = vst.msk [vmem:[%s1727_s5] sm:$0xf] %vm955_vm4, %v1060_v12  ;;  %v778_v19 = vmul.f32 %v1279_v16, %v695_v47  ;;  %v715_v20 = vadd.f32 %v1584_v39, %v714_v15 }
 0x1cd   :  { %v790_v57 = vsel %vm788_vm7, %v789_v14, %v787_v18  ;;  %v796_v45 = vand.u32 2147483648, %v1595_v62  ;;  %vm814_vm14 = vcmp.eq.f32.partialorder %v1605_v0, inf  ;;  %v817_v56 = vand.u32 2147483648, %v1605_v0 }
 0x1ce   :  { %v878_v22 = vmul.f32 %v790_v57, %v1503_v13  ;;  %v780_v24 = vsel %vm779_vm8, %v695_v47, %v778_v19  ;;  %1286 = vrsqrt.f32 %v715_v20  ;;  %vm816_vm15 = vcmp.eq.f32.partialorder %v1605_v0, 0.0 }
 0x1cf   :  { %v783_v27 = vsel %vm781_vm9, %v782_v23, %v780_v24  ;;  %vm807_vm0 = vcmp.eq.f32.partialorder %v715_v20, inf  ;;  %v810_v3 = vand.u32 2147483648, %v715_v20  ;;  %vm809_vm1 = vcmp.eq.f32.partialorder %v715_v20, 0.0 }
 0x1d0   :  { %v1063_v26 = vpack.c.bf16 %v878_v22, %v878_v22  ;;  %v877_v30 = vmul.f32 %v783_v27, %v1497_v6 }
 0x1d1   :  { %v1281_v29 = vpop.eup %1280  ;;  %v1212_v31 = vpop.f32.mrf.mxu1 }
 0x1d2   :  { %959 = vst.msk [vmem:[%s1727_s5 + $0xc] sm:$0xf] %vm955_vm4, %v1063_v26  ;;  %v799_v33 = vmul.f32 %v1281_v29, %v1591_v53  ;;  %v1621_v13 = vadd.f32 %v1212_v31, %v1584_v39  ;;  %v1062_v35 = vpack.c.bf16 %v877_v30, %v877_v30 }
 0x1d3   :  { %v724_v38 = vpop.f32.mrf.mxu1  ;;  %v1283_v40 = vpop.eup %1282 }
 0x1d4   :  { %v801_v6 = vsel %vm800_vm10, %v1591_v53, %v799_v33  ;;  %1288 = vrsqrt.f32 %v1621_v13  ;;  %958 = vst.msk [vmem:[%s1727_s5 + $0x8] sm:$0xf] %vm955_vm4, %v1062_v35  ;;  %v792_v43 = vmul.f32 %v1283_v40, %v1595_v62  ;;  %v725_v50 = vadd.f32 %v1584_v39, %v724_v38 }
 0x1d5   :  { %v804_v42 = vsel %vm802_vm11, %v803_v36, %v801_v6  ;;  %vm828_vm2 = vcmp.eq.f32.partialorder %v1621_v13, inf  ;;  %v831_v14 = vand.u32 2147483648, %v1621_v13  ;;  %vm830_vm3 = vcmp.eq.f32.partialorder %v1621_v13, 0.0 }
 0x1d6   :  { %v880_v44 = vmul.f32 %v804_v42, %v1515_v28  ;;  %v794_v46 = vsel %vm793_vm12, %v1595_v62, %v792_v43  ;;  %1290 = vrsqrt.f32 %v725_v50  ;;  %vm821_vm5 = vcmp.eq.f32.partialorder %v725_v50, inf }
 0x1d7   :  { %v797_v48 = vsel %vm795_vm13, %v796_v45, %v794_v46  ;;  %v824_v22 = vand.u32 2147483648, %v725_v50  ;;  %vm823_vm6 = vcmp.eq.f32.partialorder %v725_v50, 0.0 }
 0x1d8   :  { %v1065_v47 = vpack.c.bf16 %v880_v44, %v880_v44  ;;  %v879_v52 = vmul.f32 %v797_v48, %v1509_v21 }
 0x1d9   :  { %v1285_v51 = vpop.eup %1284  ;;  %v1215_v53 = vpop.f32.mrf.mxu1 }
 0x1da   :  { %961 = vst.msk [vmem:[%s1727_s5 + $0x14] sm:$0xf] %vm955_vm4, %v1065_v47  ;;  %v813_v28 = vmul.f32 %v1285_v51, %v1605_v0  ;;  %v1646_v54 = vadd.f32 %v1215_v53, %v1584_v39  ;;  %v1064_v55 = vpack.c.bf16 %v879_v52, %v879_v52 }
 0x1db   :  { %v734_v59 = vpop.f32.mrf.mxu1  ;;  %v1287_v60 = vpop.eup %1286 }
 0x1dc   :  { %v815_v21 = vsel %vm814_vm14, %v1605_v0, %v813_v28  ;;  %1292 = vrsqrt.f32 %v1646_v54  ;;  %960 = vst.msk [vmem:[%s1727_s5 + $0x10] sm:$0xf] %vm955_vm4, %v1064_v55  ;;  %v806_v62 = vmul.f32 %v1287_v60, %v715_v20  ;;  %v735_v63 = vadd.f32 %v1584_v39, %v734_v59 }
 0x1dd   :  { %v818_v61 = vsel %vm816_vm15, %v817_v56, %v815_v21  ;;  %vm842_vm7 = vcmp.eq.f32.partialorder %v1646_v54, inf  ;;  %vm844_vm8 = vcmp.eq.f32.partialorder %v1646_v54, 0.0 }
 0x1de   :  { %v882_v2 = vmul.f32 %v818_v61, %v1527_v41  ;;  %v808_v4 = vsel %vm807_vm0, %v715_v20, %v806_v62  ;;  %1294 = vrsqrt.f32 %v735_v63  ;;  %vm835_vm9 = vcmp.eq.f32.partialorder %v735_v63, inf }
 0x1df   :  { %v811_v7 = vsel %vm809_vm1, %v810_v3, %v808_v4  ;;  %v838_v43 = vand.u32 2147483648, %v735_v63  ;;  %vm837_vm10 = vcmp.eq.f32.partialorder %v735_v63, 0.0 }
 0x1e0   :  { %v1067_v5 = vpack.c.bf16 %v882_v2, %v882_v2  ;;  %v881_v10 = vmul.f32 %v811_v7, %v1521_v34 }
 0x1e1   :  { %v1289_v8 = vpop.eup %1288  ;;  %v1218_v11 = vpop.f32.mrf.mxu1 }
 0x1e2   :  { %963 = vst.msk [vmem:[%s1727_s5 + $0x1c] sm:$0xf] %vm955_vm4, %v1067_v5  ;;  %v827_v0 = vmul.f32 %v1289_v8, %v1621_v13  ;;  %v750_v41 = vadd.f32 %v1218_v11, %v1584_v39  ;;  %v1066_v12 = vpack.c.bf16 %v881_v10, %v881_v10 }
 0x1e3   :  { %v744_v15 = vpop.f32.mrf.mxu1  ;;  %v1291_v16 = vpop.eup %1290 }
 0x1e4   :  { %v829_v18 = vsel %vm828_vm2, %v1621_v13, %v827_v0  ;;  %1296 = vrsqrt.f32 %v750_v41  ;;  %962 = vst.msk [vmem:[%s1727_s5 + $0x18] sm:$0xf] %vm955_vm4, %v1066_v12  ;;  %v820_v57 = vmul.f32 %v1291_v16, %v725_v50  ;;  %v745_v19 = vadd.f32 %v1584_v39, %v744_v15 }
 0x1e5   :  { %v832_v34 = vsel %vm830_vm3, %v831_v14, %v829_v18  ;;  %v845_v13 = vand.u32 2147483648, %v1646_v54  ;;  %vm856_vm11 = vcmp.eq.f32.partialorder %v750_v41, inf  ;;  %vm858_vm12 = vcmp.eq.f32.partialorder %v750_v41, 0.0 }
 0x1e6   :  { %v884_v20 = vmul.f32 %v832_v34, %v1539_v58  ;;  %v822_v23 = vsel %vm821_vm5, %v725_v50, %v820_v57  ;;  %1298 = vrsqrt.f32 %v745_v19  ;;  %vm849_vm13 = vcmp.eq.f32.partialorder %v745_v19, inf }
 0x1e7   :  { %v825_v26 = vsel %vm823_vm6, %v824_v22, %v822_v23  ;;  %vm851_vm14 = vcmp.eq.f32.partialorder %v745_v19, 0.0 }
 0x1e8   :  { %v1069_v24 = vpack.c.bf16 %v884_v20, %v884_v20  ;;  %v883_v29 = vmul.f32 %v825_v26, %v1533_v49 }
 0x1e9   :  { %v1293_v27 = vpop.eup %1292  ;;  %v1221_v30 = vpop.f32.mrf.mxu1 }
 0x1ea   :  { %965 = vst.msk [vmem:[%s1727_s5 + $0x24] sm:$0xf] %vm955_vm4, %v1069_v24  ;;  %v841_v31 = vmul.f32 %v1293_v27, %v1646_v54  ;;  %v760_v58 = vadd.f32 %v1221_v30, %v1584_v39  ;;  %v1068_v33 = vpack.c.bf16 %v883_v29, %v883_v29 }
 0x1eb   :  { %v754_v35 = vpop.f32.mrf.mxu1  ;;  %v1295_v36 = vpop.eup %1294 }
 0x1ec   :  { %v843_v38 = vsel %vm842_vm7, %v1646_v54, %v841_v31  ;;  %1300 = vrsqrt.f32 %v760_v58  ;;  %964 = vst.msk [vmem:[%s1727_s5 + $0x20] sm:$0xf] %vm955_vm4, %v1068_v33  ;;  %v834_v40 = vmul.f32 %v1295_v36, %v735_v63  ;;  %v755_v6 = vadd.f32 %v1584_v39, %v754_v35 }
 0x1ed   :  { %v846_v49 = vsel %vm844_vm8, %v845_v13, %v843_v38  ;;  %v859_v39 = vand.u32 2147483648, %v750_v41  ;;  %v852_v54 = vand.u32 2147483648, %v745_v19  ;;  %vm870_vm15 = vcmp.eq.f32.partialorder %v760_v58, inf }
 0x1ee   :  { %v886_v42 = vmul.f32 %v846_v49, %v1551_v9  ;;  %v836_v50 = vsel %vm835_vm9, %v735_v63, %v834_v40  ;;  %1302 = vrsqrt.f32 %v755_v6  ;;  %v873_v63 = vand.u32 2147483648, %v760_v58 }
 0x1ef   :  { %v839_v45 = vsel %vm837_vm10, %v838_v43, %v836_v50  ;;  %vm872_vm0 = vcmp.eq.f32.partialorder %v760_v58, 0.0  ;;  %vm863_vm1 = vcmp.eq.f32.partialorder %v755_v6, inf  ;;  %v866_v5 = vand.u32 2147483648, %v755_v6 }
 0x1f0   :  { %v1071_v44 = vpack.c.bf16 %v886_v42, %v886_v42  ;;  %v885_v47 = vmul.f32 %v839_v45, %v1545_v1  ;;  %vm865_vm2 = vcmp.eq.f32.partialorder %v755_v6, 0.0 }
 0x1f1   :  { %v1297_v46 = vpop.eup %1296 }
 0x1f2   :  { %967 = vst.msk [vmem:[%s1727_s5 + $0x2c] sm:$0xf] %vm955_vm4, %v1071_v44  ;;  %v855_v48 = vmul.f32 %v1297_v46, %v750_v41  ;;  %v1070_v51 = vpack.c.bf16 %v885_v47, %v885_v47 }
 0x1f3   :  { %v1299_v9 = vpop.eup %1298 }
 0x1f4   :  { %v857_v52 = vsel %vm856_vm11, %v750_v41, %v855_v48  ;;  %966 = vst.msk [vmem:[%s1727_s5 + $0x28] sm:$0xf] %vm955_vm4, %v1070_v51  ;;  %v848_v28 = vmul.f32 %v1299_v9, %v745_v19 }
 0x1f5   :  { %v860_v53 = vsel %vm858_vm12, %v859_v39, %v857_v52 }
 0x1f6   :  { %v888_v1 = vmul.f32 %v860_v53, %v1563_v25  ;;  %v850_v55 = vsel %vm849_vm13, %v745_v19, %v848_v28 }
 0x1f7   :  { %v853_v59 = vsel %vm851_vm14, %v852_v54, %v850_v55 }
 0x1f8   :  { %v1073_v56 = vpack.c.bf16 %v888_v1, %v888_v1  ;;  %v887_v21 = vmul.f32 %v853_v59, %v1557_v17 }
 0x1f9   :  { %v1301_v60 = vpop.eup %1300 }
 0x1fa   :  { %969 = vst.msk [vmem:[%s1727_s5 + $0x34] sm:$0xf] %vm955_vm4, %v1073_v56  ;;  %v869_v61 = vmul.f32 %v1301_v60, %v760_v58  ;;  %v1072_v62 = vpack.c.bf16 %v887_v21, %v887_v21 }
 0x1fb   :  { %v1303_v2 = vpop.eup %1302 }
 0x1fc   :  { %v871_v25 = vsel %vm870_vm15, %v760_v58, %v869_v61  ;;  %968 = vst.msk [vmem:[%s1727_s5 + $0x30] sm:$0xf] %vm955_vm4, %v1072_v62  ;;  %v862_v4 = vmul.f32 %v1303_v2, %v755_v6 }
 0x1fd   :  { %v874_v3 = vsel %vm872_vm0, %v873_v63, %v871_v25 }
 0x1fe   :  { %v890_v17 = vmul.f32 %v874_v3, %v1575_v37  ;;  %v864_v7 = vsel %vm863_vm1, %v755_v6, %v862_v4 }
 0x1ff   :  { %v867_v10 = vsel %vm865_vm2, %v866_v5, %v864_v7 }
 0x200   :  { %v1075_v8 = vpack.c.bf16 %v890_v17, %v890_v17  ;;  %v889_v11 = vmul.f32 %v867_v10, %v1569_v32 }
 0x202   :  { %971 = vst.msk [vmem:[%s1727_s5 + $0x3c] sm:$0xf] %vm955_vm4, %v1075_v8  ;;  %v1074_v0 = vpack.c.bf16 %v889_v11, %v889_v11 }
 0x204   :  { %970 = vst.msk [vmem:[%s1727_s5 + $0x38] sm:$0xf] %vm955_vm4, %v1074_v0 }

// kernel: _lambda_.6
= control target key start
LH: loop header
LB: loop body
LE: loop exit
PB: predicated region body
PF: predicated region fallthrough
CT: control target
= control target key end

     0   :  { %vm324_vm0 = vcmask 261120   ;;  %s1692_s1 = inlined_call_operand.vmem [shape: bf16[288,128], index: 1, kind: input, shape index: {}]   ;;  %s1693_s0 = inlined_call_operand.vmem [shape: bf16[128,288], index: 0, kind: input, shape index: {}]   ;;  %s1694_s3 = inlined_call_operand.vmem [shape: f32[128,128], index: 3, kind: input, shape index: {}]   ;;  %s1695_s2 = inlined_call_operand.vmem [shape: f32[1,128], index: 2, kind: input, shape index: {}]   ;;  %s1696_s4 = inlined_call_operand.vmem [shape: f32[1,128], index: 4, kind: input, shape index: {}]   ;;  %s1697_s5 = inlined_call_operand.vmem [shape: bf16[128,128], index: 5, kind: output, shape index: {}]  }
   0x1   :  { %v1252_v0 = vld [vmem:[%s1692_s1 + $0x78] sm:$0xff]   ;;  %v1254_v2 = vld [vmem:[%s1692_s1 + $0x70] sm:$0xff]   ;;  %v1256_v4 = vld [vmem:[%s1692_s1 + $0x68] sm:$0xff]  }
   0x2   :  { %v1253_v1 = vld [vmem:[%s1692_s1 + $0x38] sm:$0xff]   ;;  %1070 = vmatprep.subr.bf16.mxu0 %v1252_v0  ;;  %v1255_v3 = vld [vmem:[%s1692_s1 + $0x30] sm:$0xff]   ;;  %v1257_v5 = vld [vmem:[%s1692_s1 + $0x28] sm:$0xff]  }
   0x3   :  { %1071 = vmatpush3.bf16.msra.mxu0 %v1253_v1  ;;  %v1258_v6 = vld [vmem:[%s1692_s1 + $0x60] sm:$0xff]   ;;  %v1260_v8 = vld [vmem:[%s1692_s1 + $0x58] sm:$0xff]   ;;  %v1267_v10 = vld [vmem:[%s1692_s1 + $0x88] sm:$0xff]  }
   0x4   :  { %1072 = vmatprep.subr.bf16.mxu0 %v1254_v2  ;;  %v1259_v7 = vld [vmem:[%s1692_s1 + $0x20] sm:$0xff]   ;;  %v1261_v9 = vld [vmem:[%s1692_s1 + $0x18] sm:$0xff]   ;;  %v1262_v11 = vld [vmem:[%s1692_s1 + $0x50] sm:$0xff]   ;;  %1176 = vmatprep.subr.bf16.mxu1 %v1267_v10 }
   0x5   :  { %v1263_v12 = vld [vmem:[%s1692_s1 + $0x10] sm:$0xff]   ;;  %v1264_v13 = vld [vmem:[%s1692_s1 + $0x48] sm:$0xff]   ;;  %1177 = vmatpush3.bf16.msra.mxu1 %v1267_v10  ;;  %v1272_v15 = vld [vmem:[%s1692_s1 + $0x80] sm:$0xff]  }
   0x6   :  { %v1271_v14 = vld [vmem:[%s1693_s0 + $0x4] ss:$12 sps:$4 sm:$0xff]   ;;  %v1273_v16 = vld [vmem:[%s1693_s0 + $0x8] ss:$12 sps:$4 sm:$0xff]   ;;  %1178 = vmatprep.subr.bf16.mxu1 %v1272_v15  ;;  %v1274_v17 = vld [vmem:[%s1693_s0 + $0x20] ss:$12 sps:$4 sm:$0xff]  }
   0x7   :  { %1073 = vmatpush3.bf16.msra.mxu0 %v1255_v3  ;;  %381 = vmatprep.mubr.bf16.mxu0 %v1271_v14  ;;  %v1265_v18 = vld [vmem:[%s1692_s1 + $0x8] sm:$0xff]   ;;  %v1266_v19 = vld [vmem:[%s1692_s1 + $0x40] sm:$0xff]   ;;  %v1282_v23 = vld [vmem:[%s1693_s0 + $0x50] ss:$12 sps:$4 sm:$0xff]  }
   0x8   :  { %1074 = vmatprep.subr.bf16.mxu0 %v1256_v4  ;;  %1180 = vmatprep.mubr.msk.bf16.mxu1 %vm324_vm0, %v1273_v16  ;;  %v1281_v20 = vld [vmem:[%s1693_s0 + $0x38] ss:$12 sps:$4 sm:$0xff]   ;;  %v1269_v22 = vld [vmem:[%s1693_s0] ss:$12 sps:$4 sm:$0xff]   ;;  %v1289_v24 = vld [vmem:[%s1693_s0 + $0x68] ss:$12 sps:$4 sm:$0xff]  }
   0x9   :  { %1179 = vmatpush3.bf16.msra.mxu1 %v1272_v15  ;;  %v1268_v21 = vld [vmem:[%s1692_s1] sm:$0xff]   ;;  %v1275_v25 = vld [vmem:[%s1693_s0 + $0x1c] ss:$12 sps:$4 sm:$0xff]   ;;  %v573_v28 = vld [vmem:[%s1694_s3 + $0x70] sm:$0xff] }
   0xa   :  { %v574_v26 = vld [vmem:[%s1694_s3 + $0x78] sm:$0xff]  ;;  %v1290_v27 = vld [vmem:[%s1693_s0 + $0x80] ss:$12 sps:$4 sm:$0xff]   ;;  %v569_v36 = vld [vmem:[%s1694_s3 + $0x50] sm:$0xff] }
   0xb   :  { %1075 = vmatpush3.bf16.msra.mxu0 %v1257_v5  ;;  %1196 = vmatprep.subr.mxu1 %v574_v26  ;;  %v1277_v29 = vld [vmem:[%s1693_s0 + $0x18] ss:$12 sps:$4 sm:$0xff]   ;;  %v572_v31 = vld [vmem:[%s1694_s3 + $0x68] sm:$0xff]  ;;  %v1278_v32 = vld [vmem:[%s1693_s0 + $0x34] ss:$12 sps:$4 sm:$0xff]  }
   0xc   :  { %1076 = vmatprep.subr.bf16.mxu0 %v1258_v6  ;;  %1181 = vmatmul.mubr.msk.bf16.vlgmr.msra.gmra.mxu1 %vm324_vm0, %v1274_v17  ;;  %v1297_v30 = vld [vmem:[%s1693_s0 + $0x98] ss:$12 sps:$4 sm:$0xff]   ;;  %v1298_v35 = vld [vmem:[%s1693_s0 + $0xb0] ss:$12 sps:$4 sm:$0xff]   ;;  %v568_v39 = vld [vmem:[%s1694_s3 + $0x48] sm:$0xff] }
   0xd   :  { %1184 = vmatprep.mubr.msk.bf16.mxu1 %vm324_vm0, %v1281_v20  ;;  %1197 = vmatpush3.msra.mxu1 %v574_v26  ;;  %v571_v33 = vld [vmem:[%s1694_s3 + $0x60] sm:$0xff]  ;;  %v570_v34 = vld [vmem:[%s1694_s3 + $0x58] sm:$0xff]  ;;  %v1285_v42 = vld [vmem:[%s1693_s0 + $0x48] ss:$12 sps:$4 sm:$0xff]  }
   0xe   :  { %1198 = vmatprep.subr.mxu1 %v573_v28  ;;  %v1280_v37 = vld [vmem:[%s1693_s0 + $0x30] ss:$12 sps:$4 sm:$0xff]   ;;  %v1283_v38 = vld [vmem:[%s1693_s0 + $0x4c] ss:$12 sps:$4 sm:$0xff]   ;;  %v567_v40 = vld [vmem:[%s1694_s3 + $0x40] sm:$0xff] }
   0xf   :  { %1077 = vmatpush3.bf16.msra.mxu0 %v1259_v7  ;;  %1199 = vmatpush3.msra.mxu1 %v573_v28  ;;  %v566_v41 = vld [vmem:[%s1694_s3 + $0x38] sm:$0xff]  ;;  %v1286_v43 = vld [vmem:[%s1693_s0 + $0x64] ss:$12 sps:$4 sm:$0xff]   ;;  %v1288_v44 = vld [vmem:[%s1693_s0 + $0x60] ss:$12 sps:$4 sm:$0xff]  }
  0x10   :  { %1078 = vmatprep.subr.bf16.mxu0 %v1260_v8  ;;  %1200 = vmatprep.subr.mxu1 %v572_v31  ;;  %v1291_v45 = vld [vmem:[%s1693_s0 + $0x7c] ss:$12 sps:$4 sm:$0xff]   ;;  %v1293_v46 = vld [vmem:[%s1693_s0 + $0x78] ss:$12 sps:$4 sm:$0xff]   ;;  %v1294_v47 = vld [vmem:[%s1693_s0 + $0x94] ss:$12 sps:$4 sm:$0xff]  }
  0x11   :  { %1201 = vmatpush3.msra.mxu1 %v572_v31  ;;  %v1296_v48 = vld [vmem:[%s1693_s0 + $0x90] ss:$12 sps:$4 sm:$0xff]   ;;  %v1299_v49 = vld [vmem:[%s1693_s0 + $0xac] ss:$12 sps:$4 sm:$0xff]   ;;  %v1301_v50 = vld [vmem:[%s1693_s0 + $0xa8] ss:$12 sps:$4 sm:$0xff]  }
  0x12   :  { %1202 = vmatprep.subr.mxu1 %v571_v33  ;;  %v565_v51 = vld [vmem:[%s1694_s3 + $0x30] sm:$0xff]  ;;  %v564_v52 = vld [vmem:[%s1694_s3 + $0x28] sm:$0xff]  ;;  %v563_v53 = vld [vmem:[%s1694_s3 + $0x20] sm:$0xff] }
  0x13   :  { %1079 = vmatpush3.bf16.msra.mxu0 %v1261_v9  ;;  %1203 = vmatpush3.msra.mxu1 %v571_v33  ;;  %v562_v54 = vld [vmem:[%s1694_s3 + $0x18] sm:$0xff]  ;;  %v561_v55 = vld [vmem:[%s1694_s3 + $0x10] sm:$0xff]  ;;  %v560_v56 = vld [vmem:[%s1694_s3 + $0x8] sm:$0xff] }
  0x14   :  { %1080 = vmatprep.subr.bf16.mxu0 %v1262_v11  ;;  %1185 = vmatmul.mubr.msk.bf16.gmra.mxu1 %vm324_vm0, %v1282_v23  ;;  %v559_v57 = vld [vmem:[%s1694_s3] sm:$0xff] }
  0x15   :  { %1188 = vmatprep.mubr.msk.bf16.mxu1 %vm324_vm0, %v1289_v24  ;;  %1204 = vmatprep.subr.mxu1 %v570_v34  ;;  %v1549_v62 = vld [vmem:[%s1695_s2] ss:$0 sm:$0xff] }
  0x16   :  { %1205 = vmatpush3.msra.mxu1 %v570_v34 }
  0x17   :  { %1081 = vmatpush3.bf16.msra.mxu0 %v1263_v12  ;;  %1206 = vmatprep.subr.mxu1 %v569_v36 }
  0x18   :  { %1082 = vmatprep.subr.bf16.mxu0 %v1264_v13  ;;  %1207 = vmatpush3.msra.mxu1 %v569_v36 }
  0x19   :  { %1208 = vmatprep.subr.mxu1 %v568_v39 }
  0x1a   :  { %1209 = vmatpush3.msra.mxu1 %v568_v39 }
  0x1b   :  { %1083 = vmatpush3.bf16.msra.mxu0 %v1265_v18  ;;  %1210 = vmatprep.subr.mxu1 %v567_v40 }
  0x1c   :  { %1084 = vmatprep.subr.bf16.mxu0 %v1266_v19  ;;  %1189 = vmatmul.mubr.msk.bf16.gmra.mxu1 %vm324_vm0, %v1290_v27 }
  0x1d   :  { %1192 = vmatprep.mubr.msk.bf16.mxu1 %vm324_vm0, %v1297_v30  ;;  %1211 = vmatpush3.msra.mxu1 %v567_v40 }
  0x1e   :  { %1212 = vmatprep.subr.mxu1 %v566_v41 }
  0x1f   :  { %1085 = vmatpush3.bf16.msra.mxu0 %v1268_v21  ;;  %1213 = vmatpush3.msra.mxu1 %v566_v41 }
  0x20   :  { %1214 = vmatprep.subr.mxu1 %v565_v51 }
  0x21   :  { %1215 = vmatpush3.msra.mxu1 %v565_v51 }
  0x22   :  { %382 = vmatmul.mubr.bf16.vlgmr.msra.gmra.mxu0 %v1269_v22  ;;  %1216 = vmatprep.subr.mxu1 %v564_v52 }
  0x23   :  { %389 = vmatprep.mubr.bf16.mxu0 %v1275_v25  ;;  %1217 = vmatpush3.msra.mxu1 %v564_v52 }
  0x24   :  { %1193 = vmatmul.mubr.msk.bf16.gmra.mxu1 %vm324_vm0, %v1298_v35  ;;  %1218 = vmatprep.subr.mxu1 %v563_v53 }
  0x25   :  { %1219 = vmatpush3.msra.mxu1 %v563_v53 }
  0x26   :  { %1220 = vmatprep.subr.mxu1 %v562_v54 }
  0x27   :  { %1221 = vmatpush3.msra.mxu1 %v562_v54 }
  0x28   :  { %1222 = vmatprep.subr.mxu1 %v561_v55 }
  0x29   :  { %1223 = vmatpush3.msra.mxu1 %v561_v55 }
  0x2a   :  { %390 = vmatmul.mubr.bf16.gmra.mxu0 %v1277_v29  ;;  %1224 = vmatprep.subr.mxu1 %v560_v56 }
  0x2b   :  { %397 = vmatprep.mubr.bf16.mxu0 %v1278_v32  ;;  %1225 = vmatpush3.msra.mxu1 %v560_v56 }
  0x2c   :  { %1226 = vmatprep.subr.mxu1 %v559_v57 }
  0x2d   :  { %1227 = vmatpush3.msra.mxu1 %v559_v57 }
  0x32   :  { %398 = vmatmul.mubr.bf16.gmra.mxu0 %v1280_v37 }
  0x33   :  { %405 = vmatprep.mubr.bf16.mxu0 %v1283_v38 }
  0x3a   :  { %406 = vmatmul.mubr.bf16.gmra.mxu0 %v1285_v42 }
  0x3b   :  { %413 = vmatprep.mubr.bf16.mxu0 %v1286_v43 }
  0x42   :  { %414 = vmatmul.mubr.bf16.gmra.mxu0 %v1288_v44 }
  0x43   :  { %421 = vmatprep.mubr.bf16.mxu0 %v1291_v45 }
  0x4a   :  { %422 = vmatmul.mubr.bf16.gmra.mxu0 %v1293_v46 }
  0x4b   :  { %429 = vmatprep.mubr.bf16.mxu0 %v1294_v47 }
  0x52   :  { %430 = vmatmul.mubr.bf16.gmra.mxu0 %v1296_v48 }
  0x53   :  { %437 = vmatprep.mubr.bf16.mxu0 %v1299_v49 }
  0x5a   :  { %438 = vmatmul.mubr.bf16.gmra.mxu0 %v1301_v50 }
  0xcc   :  { %v1182_v58 = vpop.f32.mrf.mxu1 }
  0xce   :  { %v480_v60 = vpop.f32.mrf.mxu1 }
  0xd0   :  { %v1183_v1 = vpop.f32.mrf.mxu1 }
  0xd2   :  { %v483_v7 = vpop.f32.mrf.mxu1 }
  0xd4   :  { %v1186_v14 = vpop.f32.mrf.mxu1 }
  0xd6   :  { %v496_v21 = vpop.f32.mrf.mxu1 }
  0xd8   :  { %v1187_v28 = vpop.f32.mrf.mxu1 }
  0xda   :  { %v499_v35 = vpop.f32.mrf.mxu1 }
  0xdc   :  { %v1190_v42 = vpop.f32.mrf.mxu1 }
  0xde   :  { %v512_v49 = vpop.f32.mrf.mxu1 }
  0xe0   :  { %v1191_v56 = vpop.f32.mrf.mxu1 }
  0xe2   :  { %v1086_v59 = vpop.f32.mrf.mxu0 }
  0xe4   :  { %v1087_v61 = vpop.f32.mrf.mxu0 }
  0xe5   :  { %v1088_v63 = vadd.f32 %v1087_v61, %v1086_v59 }
  0xe6   :  { %v1089_v0 = vpop.f32.mrf.mxu0 }
  0xe7   :  { %v384_v2 = vadd.f32 %v1088_v63, %v1549_v62 }
  0xe8   :  { %v1090_v3 = vpop.f32.mrf.mxu0 }
  0xe9   :  { %v1091_v4 = vadd.f32 %v1090_v3, %v1089_v0  ;;  %v1552_v5 = vadd.f32 %v480_v60, %v384_v2  ;;  %v515_v0 = vpop.f32.mrf.mxu1 }
  0xea   :  { %v1092_v6 = vpop.f32.mrf.mxu0 }
  0xeb   :  { %v543_v8 = vmul.f32 %v1552_v5, %v1552_v5  ;;  %v387_v9 = vadd.f32 %v1091_v4, %v1549_v62 }
  0xec   :  { %v1093_v10 = vpop.f32.mrf.mxu0 }
  0xed   :  { %v1094_v11 = vadd.f32 %v1093_v10, %v1092_v6  ;;  %v1557_v12 = vadd.f32 %v483_v7, %v387_v9  ;;  %1228 = vmatprep.mubr.f32.mxu1 %v543_v8 }
  0xee   :  { %v1095_v13 = vpop.f32.mrf.mxu0 }
  0xef   :  { %v392_v15 = vadd.f32 %v1094_v11, %v1549_v62  ;;  %v544_v16 = vmul.f32 %v1557_v12, %v1557_v12  ;;  %v1194_v11 = vpop.f32.mrf.mxu1 }
  0xf0   :  { %v1096_v17 = vpop.f32.mrf.mxu0 }
  0xf1   :  { %v1562_v18 = vadd.f32 %v1182_v58, %v392_v15  ;;  %v1097_v19 = vadd.f32 %v1096_v17, %v1095_v13  ;;  %1229 = vmatmul.mubr.f32.vlgmr.msra.gmra.mxu1 %v544_v16 }
  0xf2   :  { %v1098_v20 = vpop.f32.mrf.mxu0 }
  0xf3   :  { %v395_v22 = vadd.f32 %v1097_v19, %v1549_v62  ;;  %v545_v23 = vmul.f32 %v1562_v18, %v1562_v18 }
  0xf4   :  { %v1099_v24 = vpop.f32.mrf.mxu0 }
  0xf5   :  { %v1567_v25 = vadd.f32 %v1183_v1, %v395_v22  ;;  %v1100_v26 = vadd.f32 %v1099_v24, %v1098_v20  ;;  %1231 = vmatprep.mubr.f32.mxu1 %v545_v23  ;;  %v528_v20 = vpop.f32.mrf.mxu1 }
  0xf6   :  { %v1101_v27 = vpop.f32.mrf.mxu0 }
  0xf7   :  { %v400_v29 = vadd.f32 %v1100_v26, %v1549_v62  ;;  %v546_v30 = vmul.f32 %v1567_v25, %v1567_v25 }
  0xf8   :  { %v1102_v31 = vpop.f32.mrf.mxu0 }
  0xf9   :  { %v1103_v32 = vadd.f32 %v1102_v31, %v1101_v27  ;;  %v1572_v33 = vadd.f32 %v496_v21, %v400_v29  ;;  %1232 = vmatmul.mubr.f32.gmra.mxu1 %v546_v30 }
  0xfa   :  { %v1104_v34 = vpop.f32.mrf.mxu0 }
  0xfb   :  { %v547_v36 = vmul.f32 %v1572_v33, %v1572_v33  ;;  %v403_v37 = vadd.f32 %v1103_v32, %v1549_v62 }
  0xfc   :  { %v1105_v38 = vpop.f32.mrf.mxu0 }
  0xfd   :  { %v1106_v39 = vadd.f32 %v1105_v38, %v1104_v34  ;;  %v1577_v40 = vadd.f32 %v499_v35, %v403_v37  ;;  %1234 = vmatprep.mubr.f32.mxu1 %v547_v36 }
  0xfe   :  { %v1107_v41 = vpop.f32.mrf.mxu0 }
  0xff   :  { %v408_v43 = vadd.f32 %v1106_v39, %v1549_v62  ;;  %v548_v44 = vmul.f32 %v1577_v40, %v1577_v40 }
 0x100   :  { %v1108_v45 = vpop.f32.mrf.mxu0 }
 0x101   :  { %v1582_v46 = vadd.f32 %v1186_v14, %v408_v43  ;;  %v1109_v47 = vadd.f32 %v1108_v45, %v1107_v41  ;;  %1235 = vmatmul.mubr.f32.gmra.mxu1 %v548_v44 }
 0x102   :  { %v1110_v48 = vpop.f32.mrf.mxu0 }
 0x103   :  { %v411_v50 = vadd.f32 %v1109_v47, %v1549_v62  ;;  %v549_v51 = vmul.f32 %v1582_v46, %v1582_v46 }
 0x104   :  { %v1111_v52 = vpop.f32.mrf.mxu0 }
 0x105   :  { %v1587_v53 = vadd.f32 %v1187_v28, %v411_v50  ;;  %v1112_v54 = vadd.f32 %v1111_v52, %v1110_v48  ;;  %1237 = vmatprep.mubr.f32.mxu1 %v549_v51  ;;  %v1195_v28 = vpop.f32.mrf.mxu1  ;;  %v1634_v51 = vld [vmem:[%s1696_s4] ss:$0 sm:$0xff] }
 0x106   :  { %v1113_v55 = vpop.f32.mrf.mxu0 }
 0x107   :  { %v416_v57 = vadd.f32 %v1112_v54, %v1549_v62  ;;  %v550_v58 = vmul.f32 %v1587_v53, %v1587_v53  ;;  %v531_v35 = vpop.f32.mrf.mxu1 }
 0x108   :  { %v1114_v59 = vpop.f32.mrf.mxu0 }
 0x109   :  { %v1115_v60 = vadd.f32 %v1114_v59, %v1113_v55  ;;  %v1592_v61 = vadd.f32 %v512_v49, %v416_v57  ;;  %1238 = vmatmul.mubr.f32.gmra.mxu1 %v550_v58 }
 0x10a   :  { %v1116_v63 = vpop.f32.mrf.mxu0 }
 0x10b   :  { %v551_v1 = vmul.f32 %v1592_v61, %v1592_v61  ;;  %v419_v2 = vadd.f32 %v1115_v60, %v1549_v62 }
 0x10c   :  { %v1117_v3 = vpop.f32.mrf.mxu0 }
 0x10d   :  { %v1118_v4 = vadd.f32 %v1117_v3, %v1116_v63  ;;  %v1597_v6 = vadd.f32 %v515_v0, %v419_v2  ;;  %1240 = vmatprep.mubr.f32.mxu1 %v551_v1 }
 0x10e   :  { %v1119_v7 = vpop.f32.mrf.mxu0 }
 0x10f   :  { %v424_v8 = vadd.f32 %v1118_v4, %v1549_v62  ;;  %v552_v9 = vmul.f32 %v1597_v6, %v1597_v6 }
 0x110   :  { %v1120_v10 = vpop.f32.mrf.mxu0 }
 0x111   :  { %v1602_v13 = vadd.f32 %v1190_v42, %v424_v8  ;;  %v1121_v14 = vadd.f32 %v1120_v10, %v1119_v7  ;;  %1241 = vmatmul.mubr.f32.gmra.mxu1 %v552_v9 }
 0x112   :  { %v1122_v15 = vpop.f32.mrf.mxu0 }
 0x113   :  { %v427_v16 = vadd.f32 %v1121_v14, %v1549_v62  ;;  %v553_v17 = vmul.f32 %v1602_v13, %v1602_v13 }
 0x114   :  { %v1123_v19 = vpop.f32.mrf.mxu0 }
 0x115   :  { %v1607_v21 = vadd.f32 %v1191_v56, %v427_v16  ;;  %v1124_v22 = vadd.f32 %v1123_v19, %v1122_v15  ;;  %1243 = vmatprep.mubr.f32.mxu1 %v553_v17 }
 0x116   :  { %v1125_v23 = vpop.f32.mrf.mxu0 }
 0x117   :  { %v432_v24 = vadd.f32 %v1124_v22, %v1549_v62  ;;  %v554_v26 = vmul.f32 %v1607_v21, %v1607_v21 }
 0x118   :  { %v1126_v27 = vpop.f32.mrf.mxu0 }
 0x119   :  { %v1612_v29 = vadd.f32 %v528_v20, %v432_v24  ;;  %v1127_v30 = vadd.f32 %v1126_v27, %v1125_v23  ;;  %1244 = vmatmul.mubr.f32.gmra.mxu1 %v554_v26 }
 0x11a   :  { %v1128_v31 = vpop.f32.mrf.mxu0 }
 0x11b   :  { %v555_v32 = vmul.f32 %v1612_v29, %v1612_v29  ;;  %v435_v34 = vadd.f32 %v1127_v30, %v1549_v62 }
 0x11c   :  { %v1129_v36 = vpop.f32.mrf.mxu0 }
 0x11d   :  { %v1617_v37 = vadd.f32 %v531_v35, %v435_v34  ;;  %v1130_v38 = vadd.f32 %v1129_v36, %v1128_v31  ;;  %1246 = vmatprep.mubr.f32.mxu1 %v555_v32 }
 0x11e   :  { %v1131_v39 = vpop.f32.mrf.mxu0 }
 0x11f   :  { %v556_v41 = vmul.f32 %v1617_v37, %v1617_v37  ;;  %v440_v42 = vadd.f32 %v1130_v38, %v1549_v62 }
 0x120   :  { %v1132_v43 = vpop.f32.mrf.mxu0 }
 0x121   :  { %v1622_v44 = vadd.f32 %v1194_v11, %v440_v42  ;;  %v1133_v45 = vadd.f32 %v1132_v43, %v1131_v39  ;;  %1247 = vmatmul.mubr.f32.gmra.mxu1 %v556_v41 }
 0x123   :  { %v443_v47 = vadd.f32 %v1133_v45, %v1549_v62  ;;  %v557_v48 = vmul.f32 %v1622_v44, %v1622_v44 }
 0x125   :  { %v1627_v49 = vadd.f32 %v1195_v28, %v443_v47  ;;  %1249 = vmatprep.mubr.f32.mxu1 %v557_v48 }
 0x127   :  { %v558_v50 = vmul.f32 %v1627_v49, %v1627_v49 }
 0x129   :  { %1250 = vmatmul.mubr.f32.gmra.mxu1 %v558_v50 }
 0x1b1   :  { %v1230_v52 = vpop.f32.mrf.mxu1 }
 0x1b2   :  { %v654_v54 = vadd.f32 %v1230_v52, %v1634_v51 }
 0x1b3   :  { %v648_v55 = vpop.f32.mrf.mxu1 }
 0x1b4   :  { %1302 = vrsqrt.f32 %v654_v54  ;;  %v649_v62 = vadd.f32 %v1634_v51, %v648_v55  ;;  %vm736_vm1 = vcmp.eq.f32.partialorder %v654_v54, inf  ;;  %v739_v7 = vand.u32 2147483648, %v654_v54 }
 0x1b5   :  { %vm738_vm2 = vcmp.eq.f32.partialorder %v654_v54, 0.0 }
 0x1b6   :  { %1304 = vrsqrt.f32 %v649_v62  ;;  %vm729_vm3 = vcmp.eq.f32.partialorder %v649_v62, inf  ;;  %v732_v11 = vand.u32 2147483648, %v649_v62  ;;  %vm731_vm4 = vcmp.eq.f32.partialorder %v649_v62, 0.0 }
 0x1b9   :  { %v1233_v56 = vpop.f32.mrf.mxu1 }
 0x1ba   :  { %v664_v57 = vadd.f32 %v1233_v56, %v1634_v51 }
 0x1bb   :  { %v658_v58 = vpop.f32.mrf.mxu1 }
 0x1bc   :  { %1306 = vrsqrt.f32 %v664_v57  ;;  %v659_v59 = vadd.f32 %v1634_v51, %v658_v58  ;;  %vm750_vm5 = vcmp.eq.f32.partialorder %v664_v57, inf  ;;  %v753_v30 = vand.u32 2147483648, %v664_v57 }
 0x1bd   :  { %vm752_vm6 = vcmp.eq.f32.partialorder %v664_v57, 0.0 }
 0x1be   :  { %1308 = vrsqrt.f32 %v659_v59  ;;  %vm743_vm7 = vcmp.eq.f32.partialorder %v659_v59, inf  ;;  %v746_v32 = vand.u32 2147483648, %v659_v59  ;;  %vm745_vm8 = vcmp.eq.f32.partialorder %v659_v59, 0.0 }
 0x1c1   :  { %v1303_v60 = vpop.eup %1302  ;;  %v1236_v63 = vpop.f32.mrf.mxu1 }
 0x1c2   :  { %v735_v0 = vmul.f32 %v1303_v60, %v654_v54  ;;  %v674_v1 = vadd.f32 %v1236_v63, %v1634_v51 }
 0x1c3   :  { %v668_v2 = vpop.f32.mrf.mxu1  ;;  %v1305_v3 = vpop.eup %1304 }
 0x1c4   :  { %v737_v4 = vsel %vm736_vm1, %v654_v54, %v735_v0  ;;  %1310 = vrsqrt.f32 %v674_v1  ;;  %v728_v8 = vmul.f32 %v1305_v3, %v649_v62  ;;  %v669_v9 = vadd.f32 %v1634_v51, %v668_v2 }
 0x1c5   :  { %v740_v10 = vsel %vm738_vm2, %v739_v7, %v737_v4  ;;  %vm764_vm9 = vcmp.eq.f32.partialorder %v674_v1, inf  ;;  %v767_v52 = vand.u32 2147483648, %v674_v1  ;;  %vm766_vm10 = vcmp.eq.f32.partialorder %v674_v1, 0.0 }
 0x1c6   :  { %v730_v14 = vsel %vm729_vm3, %v649_v62, %v728_v8  ;;  %1312 = vrsqrt.f32 %v669_v9  ;;  %v840_v17 = vmul.f32 %v740_v10, %v1557_v12  ;;  %vm757_vm11 = vcmp.eq.f32.partialorder %v669_v9, inf }
 0x1c7   :  { %v733_v15 = vsel %vm731_vm4, %v732_v11, %v730_v14  ;;  %v760_v55 = vand.u32 2147483648, %v669_v9  ;;  %vm759_vm12 = vcmp.eq.f32.partialorder %v669_v9, 0.0 }
 0x1c8   :  { %v839_v19 = vmul.f32 %v733_v15, %v1552_v5 }
 0x1c9   :  { %v1307_v16 = vpop.eup %1306  ;;  %v1239_v20 = vpop.f32.mrf.mxu1 }
 0x1ca   :  { %v749_v22 = vmul.f32 %v1307_v16, %v664_v57  ;;  %v684_v23 = vadd.f32 %v1239_v20, %v1634_v51  ;;  %v1026_v24 = vpack.c.bf16 %v840_v17, %v839_v19 }
 0x1cb   :  { %v678_v26 = vpop.f32.mrf.mxu1  ;;  %v1309_v27 = vpop.eup %1308 }
 0x1cc   :  { %v751_v28 = vsel %vm750_vm5, %v664_v57, %v749_v22  ;;  %1314 = vrsqrt.f32 %v684_v23  ;;  %1027 = vst [vmem:[%s1697_s5] sm:$0xff] %v1026_v24   ;;  %v742_v31 = vmul.f32 %v1309_v27, %v659_v59  ;;  %v679_v12 = vadd.f32 %v1634_v51, %v678_v26 }
 0x1cd   :  { %v754_v5 = vsel %vm752_vm6, %v753_v30, %v751_v28  ;;  %vm778_vm13 = vcmp.eq.f32.partialorder %v684_v23, inf  ;;  %v781_v7 = vand.u32 2147483648, %v684_v23  ;;  %vm780_vm14 = vcmp.eq.f32.partialorder %v684_v23, 0.0 }
 0x1ce   :  { %v744_v34 = vsel %vm743_vm7, %v659_v59, %v742_v31  ;;  %1316 = vrsqrt.f32 %v679_v12  ;;  %v842_v38 = vmul.f32 %v754_v5, %v1567_v25  ;;  %vm771_vm15 = vcmp.eq.f32.partialorder %v679_v12, inf }
 0x1cf   :  { %v747_v35 = vsel %vm745_vm8, %v746_v32, %v744_v34  ;;  %vm773_vm0 = vcmp.eq.f32.partialorder %v679_v12, 0.0 }
 0x1d0   :  { %v841_v39 = vmul.f32 %v747_v35, %v1562_v18 }
 0x1d1   :  { %v1311_v36 = vpop.eup %1310  ;;  %v1242_v41 = vpop.f32.mrf.mxu1 }
 0x1d2   :  { %v763_v42 = vmul.f32 %v1311_v36, %v674_v1  ;;  %v694_v43 = vadd.f32 %v1242_v41, %v1634_v51  ;;  %v1031_v45 = vpack.c.bf16 %v842_v38, %v841_v39 }
 0x1d3   :  { %v688_v47 = vpop.f32.mrf.mxu1  ;;  %v1313_v48 = vpop.eup %1312 }
 0x1d4   :  { %v765_v50 = vsel %vm764_vm9, %v674_v1, %v763_v42  ;;  %1318 = vrsqrt.f32 %v694_v43  ;;  %1063 = vst [vmem:[%s1697_s5 + $0x8] sm:$0xff] %v1031_v45   ;;  %v756_v54 = vmul.f32 %v1313_v48, %v669_v9  ;;  %v689_v25 = vadd.f32 %v1634_v51, %v688_v47 }
 0x1d5   :  { %v768_v18 = vsel %vm766_vm10, %v767_v52, %v765_v50  ;;  %vm792_vm1 = vcmp.eq.f32.partialorder %v694_v43, inf  ;;  %v795_v27 = vand.u32 2147483648, %v694_v43  ;;  %vm794_vm2 = vcmp.eq.f32.partialorder %v694_v43, 0.0 }
 0x1d6   :  { %v758_v62 = vsel %vm757_vm11, %v669_v9, %v756_v54  ;;  %1320 = vrsqrt.f32 %v689_v25  ;;  %v844_v58 = vmul.f32 %v768_v18, %v1577_v40  ;;  %v774_v9 = vand.u32 2147483648, %v679_v12 }
 0x1d7   :  { %v761_v56 = vsel %vm759_vm12, %v760_v55, %v758_v62  ;;  %vm785_vm3 = vcmp.eq.f32.partialorder %v689_v25, inf  ;;  %v788_v30 = vand.u32 2147483648, %v689_v25  ;;  %vm787_vm4 = vcmp.eq.f32.partialorder %v689_v25, 0.0 }
 0x1d8   :  { %v843_v59 = vmul.f32 %v761_v56, %v1572_v33 }
 0x1d9   :  { %v1315_v57 = vpop.eup %1314  ;;  %v1245_v60 = vpop.f32.mrf.mxu1 }
 0x1da   :  { %v777_v63 = vmul.f32 %v1315_v57, %v684_v23  ;;  %v704_v0 = vadd.f32 %v1245_v60, %v1634_v51  ;;  %v1036_v1 = vpack.c.bf16 %v844_v58, %v843_v59 }
 0x1db   :  { %v698_v2 = vpop.f32.mrf.mxu1  ;;  %v1317_v3 = vpop.eup %1316 }
 0x1dc   :  { %v779_v4 = vsel %vm778_vm13, %v684_v23, %v777_v63  ;;  %1322 = vrsqrt.f32 %v704_v0  ;;  %1064 = vst [vmem:[%s1697_s5 + $0x10] sm:$0xff] %v1036_v1   ;;  %v770_v8 = vmul.f32 %v1317_v3, %v679_v12  ;;  %v699_v40 = vadd.f32 %v1634_v51, %v698_v2 }
 0x1dd   :  { %v782_v33 = vsel %vm780_vm14, %v781_v7, %v779_v4  ;;  %vm806_vm5 = vcmp.eq.f32.partialorder %v704_v0, inf  ;;  %v809_v45 = vand.u32 2147483648, %v704_v0  ;;  %vm808_vm6 = vcmp.eq.f32.partialorder %v704_v0, 0.0 }
 0x1de   :  { %v772_v10 = vsel %vm771_vm15, %v679_v12, %v770_v8  ;;  %1324 = vrsqrt.f32 %v699_v40  ;;  %v846_v15 = vmul.f32 %v782_v33, %v1587_v53  ;;  %vm799_vm7 = vcmp.eq.f32.partialorder %v699_v40, inf }
 0x1df   :  { %v775_v11 = vsel %vm773_vm0, %v774_v9, %v772_v10  ;;  %v802_v48 = vand.u32 2147483648, %v699_v40  ;;  %vm801_vm8 = vcmp.eq.f32.partialorder %v699_v40, 0.0 }
 0x1e0   :  { %v845_v16 = vmul.f32 %v775_v11, %v1582_v46 }
 0x1e1   :  { %v1319_v14 = vpop.eup %1318  ;;  %v1248_v17 = vpop.f32.mrf.mxu1 }
 0x1e2   :  { %v791_v19 = vmul.f32 %v1319_v14, %v694_v43  ;;  %v714_v20 = vadd.f32 %v1248_v17, %v1634_v51  ;;  %v1041_v22 = vpack.c.bf16 %v846_v15, %v845_v16 }
 0x1e3   :  { %v708_v23 = vpop.f32.mrf.mxu1  ;;  %v1321_v24 = vpop.eup %1320 }
 0x1e4   :  { %v793_v26 = vsel %vm792_vm1, %v694_v43, %v791_v19  ;;  %1326 = vrsqrt.f32 %v714_v20  ;;  %1065 = vst [vmem:[%s1697_s5 + $0x18] sm:$0xff] %v1041_v22   ;;  %v784_v28 = vmul.f32 %v1321_v24, %v689_v25  ;;  %v709_v53 = vadd.f32 %v1634_v51, %v708_v23 }
 0x1e5   :  { %v796_v46 = vsel %vm794_vm2, %v795_v27, %v793_v26  ;;  %vm820_vm9 = vcmp.eq.f32.partialorder %v714_v20, inf  ;;  %v823_v58 = vand.u32 2147483648, %v714_v20  ;;  %vm822_vm10 = vcmp.eq.f32.partialorder %v714_v20, 0.0 }
 0x1e6   :  { %v786_v31 = vsel %vm785_vm3, %v689_v25, %v784_v28  ;;  %1328 = vrsqrt.f32 %v709_v53  ;;  %v848_v32 = vmul.f32 %v796_v46, %v1597_v6  ;;  %vm813_vm11 = vcmp.eq.f32.partialorder %v709_v53, inf }
 0x1e7   :  { %v789_v12 = vsel %vm787_vm4, %v788_v30, %v786_v31  ;;  %v816_v60 = vand.u32 2147483648, %v709_v53  ;;  %vm815_vm12 = vcmp.eq.f32.partialorder %v709_v53, 0.0 }
 0x1e8   :  { %v847_v34 = vmul.f32 %v789_v12, %v1592_v61 }
 0x1e9   :  { %v1323_v5 = vpop.eup %1322  ;;  %v1251_v35 = vpop.f32.mrf.mxu1 }
 0x1ea   :  { %v805_v36 = vmul.f32 %v1323_v5, %v704_v0  ;;  %v724_v38 = vadd.f32 %v1251_v35, %v1634_v51  ;;  %v1046_v39 = vpack.c.bf16 %v848_v32, %v847_v34 }
 0x1eb   :  { %v718_v41 = vpop.f32.mrf.mxu1  ;;  %v1325_v42 = vpop.eup %1324 }
 0x1ec   :  { %v807_v43 = vsel %vm806_vm5, %v704_v0, %v805_v36  ;;  %1330 = vrsqrt.f32 %v724_v38  ;;  %1066 = vst [vmem:[%s1697_s5 + $0x20] sm:$0xff] %v1046_v39   ;;  %v798_v47 = vmul.f32 %v1325_v42, %v699_v40  ;;  %v719_v6 = vadd.f32 %v1634_v51, %v718_v41 }
 0x1ed   :  { %v810_v61 = vsel %vm808_vm6, %v809_v45, %v807_v43  ;;  %vm834_vm13 = vcmp.eq.f32.partialorder %v724_v38, inf  ;;  %v837_v8 = vand.u32 2147483648, %v724_v38  ;;  %vm836_vm14 = vcmp.eq.f32.partialorder %v724_v38, 0.0 }
 0x1ee   :  { %v800_v50 = vsel %vm799_vm7, %v699_v40, %v798_v47  ;;  %1332 = vrsqrt.f32 %v719_v6  ;;  %v850_v25 = vmul.f32 %v810_v61, %v1607_v21  ;;  %vm827_vm15 = vcmp.eq.f32.partialorder %v719_v6, inf }
 0x1ef   :  { %v803_v52 = vsel %vm801_vm8, %v802_v48, %v800_v50  ;;  %v830_v9 = vand.u32 2147483648, %v719_v6  ;;  %vm829_vm0 = vcmp.eq.f32.partialorder %v719_v6, 0.0 }
 0x1f0   :  { %v849_v18 = vmul.f32 %v803_v52, %v1602_v13 }
 0x1f1   :  { %v1327_v54 = vpop.eup %1326 }
 0x1f2   :  { %v819_v55 = vmul.f32 %v1327_v54, %v714_v20  ;;  %v1051_v62 = vpack.c.bf16 %v850_v25, %v849_v18 }
 0x1f3   :  { %v1329_v56 = vpop.eup %1328 }
 0x1f4   :  { %v821_v57 = vsel %vm820_vm9, %v714_v20, %v819_v55  ;;  %1067 = vst [vmem:[%s1697_s5 + $0x28] sm:$0xff] %v1051_v62   ;;  %v812_v51 = vmul.f32 %v1329_v56, %v709_v53 }
 0x1f5   :  { %v824_v59 = vsel %vm822_vm10, %v823_v58, %v821_v57 }
 0x1f6   :  { %v814_v63 = vsel %vm813_vm11, %v709_v53, %v812_v51  ;;  %v852_v13 = vmul.f32 %v824_v59, %v1617_v37 }
 0x1f7   :  { %v817_v21 = vsel %vm815_vm12, %v816_v60, %v814_v63 }
 0x1f8   :  { %v851_v1 = vmul.f32 %v817_v21, %v1612_v29 }
 0x1f9   :  { %v1331_v0 = vpop.eup %1330 }
 0x1fa   :  { %v833_v2 = vmul.f32 %v1331_v0, %v724_v38  ;;  %v1056_v3 = vpack.c.bf16 %v852_v13, %v851_v1 }
 0x1fb   :  { %v1333_v4 = vpop.eup %1332 }
 0x1fc   :  { %v835_v7 = vsel %vm834_vm13, %v724_v38, %v833_v2  ;;  %1068 = vst [vmem:[%s1697_s5 + $0x30] sm:$0xff] %v1056_v3   ;;  %v826_v40 = vmul.f32 %v1333_v4, %v719_v6 }
 0x1fd   :  { %v838_v33 = vsel %vm836_vm14, %v837_v8, %v835_v7 }
 0x1fe   :  { %v828_v10 = vsel %vm827_vm15, %v719_v6, %v826_v40  ;;  %v854_v29 = vmul.f32 %v838_v33, %v1627_v49 }
 0x1ff   :  { %v831_v37 = vsel %vm829_vm0, %v830_v9, %v828_v10 }
 0x200   :  { %v853_v11 = vmul.f32 %v831_v37, %v1622_v44 }
 0x202   :  { %v1061_v14 = vpack.c.bf16 %v854_v29, %v853_v11 }
 0x204   :  { %1069 = vst [vmem:[%s1697_s5 + $0x38] sm:$0xff] %v1061_v14  }

// kernel: _lambda_.7
= control target key start
LH: loop header
LB: loop body
LE: loop exit
PB: predicated region body
PF: predicated region fallthrough
CT: control target
= control target key end

     0   :  { %v1945_v0 = vmov 0   ;;  %vm774_vm0 = vcmask 261120   ;;  %s2808_s1 = inlined_call_operand.vmem [shape: bf16[288,32], index: 1, kind: input, shape index: {}]   ;;  %s2809_s0 = inlined_call_operand.vmem [shape: bf16[512,288], index: 0, kind: input, shape index: {}]   ;;  %s2810_s2 = inlined_call_operand.vmem [shape: f32[1,32], index: 2, kind: input, shape index: {}]   ;;  %s2811_s3 = inlined_call_operand.vmem [shape: f32[512,32], index: 3, kind: output, shape index: {}]  }
   0x1   :  { %871 = vmatprep.subr.bf16.mxu0 %v1945_v0  ;;  %1766 = vmatprep.subr.bf16.mxu1 %v1945_v0  ;;  %v1799_v1 = vld [vmem:[%s2808_s1 + $0x38] sm:$0xff]   ;;  %v1800_v2 = vld [vmem:[%s2808_s1 + $0x30] sm:$0xff]   ;;  %v1801_v3 = vld [vmem:[%s2808_s1 + $0x28] sm:$0xff]  }
   0x2   :  { %872 = vmatpush1.bf16.msra.mxu0 %v1799_v1  ;;  %1782 = vmatpush1.bf16.msra.mxu1 %v1799_v1  ;;  %v1802_v4 = vld [vmem:[%s2808_s1 + $0x20] sm:$0xff]   ;;  %v1803_v5 = vld [vmem:[%s2808_s1 + $0x18] sm:$0xff]   ;;  %v1804_v7 = vld [vmem:[%s2808_s1 + $0x10] sm:$0xff]  }
   0x3   :  { %873 = vmatprep.subr.bf16.mxu0 %v1945_v0  ;;  %1767 = vmatprep.subr.bf16.mxu1 %v1945_v0  ;;  %v1817_v6 = vld [vmem:[%s2809_s0 + $0x4] ss:$12 sps:$4 sm:$0xff]   ;;  %v1805_v9 = vld [vmem:[%s2808_s1 + $0x8] sm:$0xff]   ;;  %v1807_v11 = vld [vmem:[%s2808_s1 + $0x78] sm:$0xff]  }
   0x4   :  { %v1820_v8 = vld [vmem:[%s2809_s0 + $0x244] ss:$12 sps:$4 sm:$0xff]   ;;  %903 = vmatprep.mubr.bf16.mxu0 %v1817_v6  ;;  %v1809_v13 = vld [vmem:[%s2808_s1 + $0x68] sm:$0xff]   ;;  %v1811_v15 = vld [vmem:[%s2808_s1 + $0x58] sm:$0xff]  }
   0x5   :  { %1095 = vmatprep.mubr.bf16.mxu1 %v1820_v8  ;;  %v1806_v10 = vld [vmem:[%s2808_s1] sm:$0xff]   ;;  %v1808_v12 = vld [vmem:[%s2808_s1 + $0x70] sm:$0xff]   ;;  %v1813_v17 = vld [vmem:[%s2808_s1 + $0x48] sm:$0xff]  }
   0x6   :  { %874 = vmatpush1.bf16.msra.mxu0 %v1800_v2  ;;  %1783 = vmatpush1.bf16.msra.mxu1 %v1800_v2  ;;  %v1810_v14 = vld [vmem:[%s2808_s1 + $0x60] sm:$0xff]   ;;  %v1812_v16 = vld [vmem:[%s2808_s1 + $0x50] sm:$0xff]   ;;  %v1821_v19 = vld [vmem:[%s2808_s1 + $0x88] sm:$0xff]  }
   0x7   :  { %875 = vmatprep.subr.bf16.mxu0 %v1945_v0  ;;  %1768 = vmatprep.subr.bf16.mxu1 %v1945_v0  ;;  %v1814_v18 = vld [vmem:[%s2808_s1 + $0x40] sm:$0xff]   ;;  %v1822_v22 = vld [vmem:[%s2809_s0 + $0x1c] ss:$12 sps:$4 sm:$0xff]   ;;  %v1834_v31 = vld [vmem:[%s2809_s0 + $0x4c] ss:$12 sps:$4 sm:$0xff]  }
   0x8   :  { %v1815_v20 = vld [vmem:[%s2809_s0] ss:$12 sps:$4 sm:$0xff]   ;;  %v1824_v23 = vld [vmem:[%s2809_s0 + $0x25c] ss:$12 sps:$4 sm:$0xff]   ;;  %v1826_v25 = vld [vmem:[%s2809_s0 + $0x18] ss:$12 sps:$4 sm:$0xff]  }
   0x9   :  { %v1818_v21 = vld [vmem:[%s2809_s0 + $0x240] ss:$12 sps:$4 sm:$0xff]   ;;  %v1827_v26 = vld [vmem:[%s2809_s0 + $0x258] ss:$12 sps:$4 sm:$0xff]   ;;  %v1832_v29 = vld [vmem:[%s2809_s0 + $0x30] ss:$12 sps:$4 sm:$0xff]  }
   0xa   :  { %876 = vmatpush1.bf16.msra.mxu0 %v1801_v3  ;;  %1784 = vmatpush1.bf16.msra.mxu1 %v1801_v3  ;;  %v1846_v24 = vld [vmem:[%s2808_s1 + $0x80] sm:$0xff]   ;;  %v1833_v30 = vld [vmem:[%s2809_s0 + $0x270] ss:$12 sps:$4 sm:$0xff]   ;;  %v1836_v32 = vld [vmem:[%s2809_s0 + $0x28c] ss:$12 sps:$4 sm:$0xff]  }
   0xb   :  { %877 = vmatprep.subr.bf16.mxu0 %v1945_v0  ;;  %1769 = vmatprep.subr.bf16.mxu1 %v1945_v0  ;;  %v1828_v27 = vld [vmem:[%s2809_s0 + $0x34] ss:$12 sps:$4 sm:$0xff]   ;;  %v1840_v35 = vld [vmem:[%s2809_s0 + $0x64] ss:$12 sps:$4 sm:$0xff]   ;;  %v1847_v39 = vld [vmem:[%s2809_s0 + $0x7c] ss:$12 sps:$4 sm:$0xff]  }
   0xc   :  { %v1830_v28 = vld [vmem:[%s2809_s0 + $0x274] ss:$12 sps:$4 sm:$0xff]   ;;  %v1842_v36 = vld [vmem:[%s2809_s0 + $0x2a4] ss:$12 sps:$4 sm:$0xff]   ;;  %v1849_v40 = vld [vmem:[%s2809_s0 + $0x2bc] ss:$12 sps:$4 sm:$0xff]  }
   0xd   :  { %v1838_v33 = vld [vmem:[%s2809_s0 + $0x48] ss:$12 sps:$4 sm:$0xff]   ;;  %v1844_v37 = vld [vmem:[%s2809_s0 + $0x60] ss:$12 sps:$4 sm:$0xff]   ;;  %v1851_v41 = vld [vmem:[%s2809_s0 + $0x78] ss:$12 sps:$4 sm:$0xff]  }
   0xe   :  { %878 = vmatpush1.bf16.msra.mxu0 %v1802_v4  ;;  %1785 = vmatpush1.bf16.msra.mxu1 %v1802_v4  ;;  %v1839_v34 = vld [vmem:[%s2809_s0 + $0x288] ss:$12 sps:$4 sm:$0xff]   ;;  %v1845_v38 = vld [vmem:[%s2809_s0 + $0x2a0] ss:$12 sps:$4 sm:$0xff]   ;;  %v1852_v42 = vld [vmem:[%s2809_s0 + $0x2b8] ss:$12 sps:$4 sm:$0xff]  }
   0xf   :  { %879 = vmatprep.subr.bf16.mxu0 %v1945_v0  ;;  %1770 = vmatprep.subr.bf16.mxu1 %v1945_v0  ;;  %v1853_v43 = vld [vmem:[%s2809_s0 + $0x94] ss:$12 sps:$4 sm:$0xff]   ;;  %v1857_v45 = vld [vmem:[%s2809_s0 + $0x90] ss:$12 sps:$4 sm:$0xff]   ;;  %v1859_v47 = vld [vmem:[%s2809_s0 + $0xac] ss:$12 sps:$4 sm:$0xff]  }
  0x10   :  { %v1855_v44 = vld [vmem:[%s2809_s0 + $0x2d4] ss:$12 sps:$4 sm:$0xff]   ;;  %v1858_v46 = vld [vmem:[%s2809_s0 + $0x2d0] ss:$12 sps:$4 sm:$0xff]   ;;  %v1861_v48 = vld [vmem:[%s2809_s0 + $0x2ec] ss:$12 sps:$4 sm:$0xff]  }
  0x11   :  { %v1863_v49 = vld [vmem:[%s2809_s0 + $0xa8] ss:$12 sps:$4 sm:$0xff]   ;;  %v1865_v51 = vld [vmem:[%s2809_s0 + $0xc4] ss:$12 sps:$4 sm:$0xff]   ;;  %v1868_v53 = vld [vmem:[%s2809_s0 + $0xc0] ss:$12 sps:$4 sm:$0xff]  }
  0x12   :  { %880 = vmatpush1.bf16.msra.mxu0 %v1803_v5  ;;  %1786 = vmatpush1.bf16.msra.mxu1 %v1803_v5  ;;  %v1864_v50 = vld [vmem:[%s2809_s0 + $0x2e8] ss:$12 sps:$4 sm:$0xff]   ;;  %v1869_v54 = vld [vmem:[%s2809_s0 + $0x20] ss:$12 sps:$4 sm:$0xff]   ;;  %v1872_v56 = vld [vmem:[%s2809_s0 + $0x38] ss:$12 sps:$4 sm:$0xff]  }
  0x13   :  { %881 = vmatprep.subr.bf16.mxu0 %v1945_v0  ;;  %1771 = vmatprep.subr.bf16.mxu1 %v1945_v0  ;;  %v1867_v52 = vld [vmem:[%s2809_s0 + $0x8] ss:$12 sps:$4 sm:$0xff]   ;;  %v1873_v57 = vld [vmem:[%s2809_s0 + $0xd8] ss:$12 sps:$4 sm:$0xff]   ;;  %v1874_v58 = vld [vmem:[%s2809_s0 + $0x50] ss:$12 sps:$4 sm:$0xff]  }
  0x14   :  { %v1870_v55 = vld [vmem:[%s2809_s0 + $0xdc] ss:$12 sps:$4 sm:$0xff]   ;;  %v1875_v59 = vld [vmem:[%s2809_s0 + $0xf4] ss:$12 sps:$4 sm:$0xff]   ;;  %v1880_v63 = vld [vmem:[%s2809_s0 + $0x10c] ss:$12 sps:$4 sm:$0xff]  }
  0x15   :  { %v1877_v60 = vld [vmem:[%s2809_s0 + $0x68] ss:$12 sps:$4 sm:$0xff]   ;;  %v1878_v61 = vld [vmem:[%s2809_s0 + $0xf0] ss:$12 sps:$4 sm:$0xff]   ;;  %v1879_v62 = vld [vmem:[%s2809_s0 + $0x80] ss:$12 sps:$4 sm:$0xff]  }
  0x16   :  { %882 = vmatpush1.bf16.msra.mxu0 %v1804_v7  ;;  %1787 = vmatpush1.bf16.msra.mxu1 %v1804_v7  ;;  %v1883_v1 = vld [vmem:[%s2809_s0 + $0x108] ss:$12 sps:$4 sm:$0xff]   ;;  %v1884_v2 = vld [vmem:[%s2809_s0 + $0xb0] ss:$12 sps:$4 sm:$0xff]   ;;  %v1888_v5 = vld [vmem:[%s2809_s0 + $0x120] ss:$12 sps:$4 sm:$0xff]  }
  0x17   :  { %883 = vmatprep.subr.bf16.mxu0 %v1945_v0  ;;  %1772 = vmatprep.subr.bf16.mxu1 %v1945_v0  ;;  %v1885_v3 = vld [vmem:[%s2809_s0 + $0x124] ss:$12 sps:$4 sm:$0xff]   ;;  %v1887_v4 = vld [vmem:[%s2809_s0 + $0xc8] ss:$12 sps:$4 sm:$0xff]   ;;  %v1889_v6 = vld [vmem:[%s2809_s0 + $0xe0] ss:$12 sps:$4 sm:$0xff]  }
  0x18   :  { %v1890_v7 = vld [vmem:[%s2809_s0 + $0x13c] ss:$12 sps:$4 sm:$0xff]   ;;  %v1892_v8 = vld [vmem:[%s2809_s0 + $0xf8] ss:$12 sps:$4 sm:$0xff]  }
  0x1a   :  { %884 = vmatpush1.bf16.msra.mxu0 %v1805_v9  ;;  %1788 = vmatpush1.bf16.msra.mxu1 %v1805_v9  ;;  %v1893_v9 = vld [vmem:[%s2809_s0 + $0x138] ss:$12 sps:$4 sm:$0xff]  }
  0x1b   :  { %885 = vmatprep.subr.bf16.mxu0 %v1945_v0  ;;  %1773 = vmatprep.subr.bf16.mxu1 %v1945_v0 }
  0x1e   :  { %886 = vmatpush1.bf16.msra.mxu0 %v1806_v10  ;;  %1789 = vmatpush1.bf16.msra.mxu1 %v1806_v10  ;;  %v1894_v10 = vld [vmem:[%s2809_s0 + $0x110] ss:$12 sps:$4 sm:$0xff]  }
  0x1f   :  { %887 = vmatprep.subr.bf16.mxu0 %v1945_v0  ;;  %1774 = vmatprep.subr.bf16.mxu1 %v1945_v0 }
  0x22   :  { %888 = vmatpush2.bf16.msra.mxu0 %v1807_v11  ;;  %1790 = vmatpush2.bf16.msra.mxu1 %v1807_v11  ;;  %v1895_v11 = vld [vmem:[%s2809_s0 + $0x154] ss:$12 sps:$4 sm:$0xff]  }
  0x23   :  { %889 = vmatprep.subr.bf16.mxu0 %v1945_v0  ;;  %1775 = vmatprep.subr.bf16.mxu1 %v1945_v0 }
  0x26   :  { %890 = vmatpush2.bf16.msra.mxu0 %v1808_v12  ;;  %1791 = vmatpush2.bf16.msra.mxu1 %v1808_v12  ;;  %v1897_v12 = vld [vmem:[%s2809_s0 + $0x128] ss:$12 sps:$4 sm:$0xff]  }
  0x27   :  { %891 = vmatprep.subr.bf16.mxu0 %v1945_v0  ;;  %1776 = vmatprep.subr.bf16.mxu1 %v1945_v0 }
  0x2a   :  { %892 = vmatpush2.bf16.msra.mxu0 %v1809_v13  ;;  %1792 = vmatpush2.bf16.msra.mxu1 %v1809_v13  ;;  %v1898_v13 = vld [vmem:[%s2809_s0 + $0x150] ss:$12 sps:$4 sm:$0xff]  }
  0x2b   :  { %893 = vmatprep.subr.bf16.mxu0 %v1945_v0  ;;  %1777 = vmatprep.subr.bf16.mxu1 %v1945_v0 }
  0x2e   :  { %894 = vmatpush2.bf16.msra.mxu0 %v1810_v14  ;;  %1793 = vmatpush2.bf16.msra.mxu1 %v1810_v14  ;;  %v1899_v14 = vld [vmem:[%s2809_s0 + $0x140] ss:$12 sps:$4 sm:$0xff]  }
  0x2f   :  { %895 = vmatprep.subr.bf16.mxu0 %v1945_v0  ;;  %1778 = vmatprep.subr.bf16.mxu1 %v1945_v0 }
  0x32   :  { %896 = vmatpush2.bf16.msra.mxu0 %v1811_v15  ;;  %1794 = vmatpush2.bf16.msra.mxu1 %v1811_v15  ;;  %v1900_v15 = vld [vmem:[%s2809_s0 + $0x16c] ss:$12 sps:$4 sm:$0xff]  }
  0x33   :  { %897 = vmatprep.subr.bf16.mxu0 %v1945_v0  ;;  %1779 = vmatprep.subr.bf16.mxu1 %v1945_v0 }
  0x36   :  { %898 = vmatpush2.bf16.msra.mxu0 %v1812_v16  ;;  %1795 = vmatpush2.bf16.msra.mxu1 %v1812_v16  ;;  %v1902_v16 = vld [vmem:[%s2809_s0 + $0x158] ss:$12 sps:$4 sm:$0xff]  }
  0x37   :  { %899 = vmatprep.subr.bf16.mxu0 %v1945_v0  ;;  %1780 = vmatprep.subr.bf16.mxu1 %v1945_v0 }
  0x3a   :  { %900 = vmatpush2.bf16.msra.mxu0 %v1813_v17  ;;  %1796 = vmatpush2.bf16.msra.mxu1 %v1813_v17  ;;  %v1903_v17 = vld [vmem:[%s2809_s0 + $0x168] ss:$12 sps:$4 sm:$0xff]  }
  0x3b   :  { %901 = vmatprep.subr.bf16.mxu0 %v1945_v0  ;;  %1781 = vmatprep.subr.bf16.mxu1 %v1945_v0  ;;  %v1882_v0 = vld [vmem:[%s2809_s0 + $0x98] ss:$12 sps:$4 sm:$0xff]  }
  0x3e   :  { %902 = vmatpush2.bf16.msra.mxu0 %v1814_v18  ;;  %1797 = vmatpush2.bf16.msra.mxu1 %v1814_v18  ;;  %v1904_v18 = vld [vmem:[%s2809_s0 + $0x170] ss:$12 sps:$4 sm:$0xff]  }
  0x3f   :  { %1698 = vmatprep.subr.bf16.mxu1 %v1821_v19 }
  0x41   :  { %904 = vmatmul.mubr.bf16.vlgmr.msra.gmra.mxu0 %v1815_v20  ;;  %1096 = vmatmul.mubr.bf16.vlgmr.msra.gmra.mxu1 %v1818_v21  ;;  %v1907_v20 = vld [vmem:[%s2809_s0 + $0x188] ss:$12 sps:$4 sm:$0xff]   ;;  %v1908_v21 = vld [vmem:[%s2809_s0 + $0x180] ss:$12 sps:$4 sm:$0xff]  }
  0x42   :  { %1699 = vmatpush3.bf16.msra.mxu1 %v1821_v19  ;;  %911 = vmatprep.mubr.bf16.mxu0 %v1822_v22  ;;  %v1905_v19 = vld [vmem:[%s2809_s0 + $0x184] ss:$12 sps:$4 sm:$0xff]   ;;  %v1909_v22 = vld [vmem:[%s2809_s0 + $0x1a0] ss:$12 sps:$4 sm:$0xff]  }
  0x43   :  { %1103 = vmatprep.mubr.bf16.mxu1 %v1824_v23  ;;  %1700 = vmatprep.subr.bf16.mxu1 %v1846_v24  ;;  %v1910_v23 = vld [vmem:[%s2809_s0 + $0x19c] ss:$12 sps:$4 sm:$0xff]  }
  0x46   :  { %1701 = vmatpush3.bf16.msra.mxu1 %v1846_v24  ;;  %v1912_v24 = vld [vmem:[%s2809_s0 + $0x1b8] ss:$12 sps:$4 sm:$0xff]  }
  0x49   :  { %912 = vmatmul.mubr.bf16.gmra.mxu0 %v1826_v25  ;;  %1104 = vmatmul.mubr.bf16.gmra.mxu1 %v1827_v26  ;;  %v1913_v25 = vld [vmem:[%s2809_s0 + $0x198] ss:$12 sps:$4 sm:$0xff]   ;;  %v1914_v26 = vld [vmem:[%s2809_s0 + $0x1d0] ss:$12 sps:$4 sm:$0xff]  }
  0x4a   :  { %919 = vmatprep.mubr.bf16.mxu0 %v1828_v27  ;;  %1111 = vmatprep.mubr.bf16.mxu1 %v1830_v28  ;;  %v1915_v27 = vld [vmem:[%s2809_s0 + $0x1b4] ss:$12 sps:$4 sm:$0xff]  }
  0x4b   :  { %v1917_v28 = vld [vmem:[%s2809_s0 + $0x1e8] ss:$12 sps:$4 sm:$0xff]  }
  0x51   :  { %920 = vmatmul.mubr.bf16.gmra.mxu0 %v1832_v29  ;;  %1112 = vmatmul.mubr.bf16.gmra.mxu1 %v1833_v30  ;;  %v1918_v29 = vld [vmem:[%s2809_s0 + $0x1b0] ss:$12 sps:$4 sm:$0xff]   ;;  %v1919_v30 = vld [vmem:[%s2809_s0 + $0x200] ss:$12 sps:$4 sm:$0xff]  }
  0x52   :  { %927 = vmatprep.mubr.bf16.mxu0 %v1834_v31  ;;  %1119 = vmatprep.mubr.bf16.mxu1 %v1836_v32  ;;  %v1920_v31 = vld [vmem:[%s2809_s0 + $0x1cc] ss:$12 sps:$4 sm:$0xff]  }
  0x53   :  { %v1922_v32 = vld [vmem:[%s2809_s0 + $0x218] ss:$12 sps:$4 sm:$0xff]  }
  0x59   :  { %928 = vmatmul.mubr.bf16.gmra.mxu0 %v1838_v33  ;;  %1120 = vmatmul.mubr.bf16.gmra.mxu1 %v1839_v34  ;;  %v1923_v33 = vld [vmem:[%s2809_s0 + $0x1c8] ss:$12 sps:$4 sm:$0xff]   ;;  %v1924_v34 = vld [vmem:[%s2809_s0 + $0x230] ss:$12 sps:$4 sm:$0xff]  }
  0x5a   :  { %935 = vmatprep.mubr.bf16.mxu0 %v1840_v35  ;;  %1127 = vmatprep.mubr.bf16.mxu1 %v1842_v36  ;;  %v1925_v35 = vld [vmem:[%s2809_s0 + $0x1e4] ss:$12 sps:$4 sm:$0xff]   ;;  %v1927_v36 = vld [vmem:[%s2809_s0 + $0x248] ss:$12 sps:$4 sm:$0xff]  }
  0x61   :  { %936 = vmatmul.mubr.bf16.gmra.mxu0 %v1844_v37  ;;  %1128 = vmatmul.mubr.bf16.gmra.mxu1 %v1845_v38  ;;  %v1928_v37 = vld [vmem:[%s2809_s0 + $0x1e0] ss:$12 sps:$4 sm:$0xff]  }
  0x62   :  { %943 = vmatprep.mubr.bf16.mxu0 %v1847_v39  ;;  %1135 = vmatprep.mubr.bf16.mxu1 %v1849_v40  ;;  %v1929_v38 = vld [vmem:[%s2809_s0 + $0x260] ss:$12 sps:$4 sm:$0xff]   ;;  %v1930_v39 = vld [vmem:[%s2809_s0 + $0x1fc] ss:$12 sps:$4 sm:$0xff]   ;;  %v1932_v40 = vld [vmem:[%s2809_s0 + $0x278] ss:$12 sps:$4 sm:$0xff]  }
  0x69   :  { %944 = vmatmul.mubr.bf16.gmra.mxu0 %v1851_v41  ;;  %1136 = vmatmul.mubr.bf16.gmra.mxu1 %v1852_v42  ;;  %v1933_v41 = vld [vmem:[%s2809_s0 + $0x1f8] ss:$12 sps:$4 sm:$0xff]   ;;  %v1934_v42 = vld [vmem:[%s2809_s0 + $0x290] ss:$12 sps:$4 sm:$0xff]  }
  0x6a   :  { %951 = vmatprep.mubr.bf16.mxu0 %v1853_v43  ;;  %1143 = vmatprep.mubr.bf16.mxu1 %v1855_v44  ;;  %v1935_v43 = vld [vmem:[%s2809_s0 + $0x214] ss:$12 sps:$4 sm:$0xff]  }
  0x6b   :  { %v1937_v44 = vld [vmem:[%s2809_s0 + $0x2a8] ss:$12 sps:$4 sm:$0xff]  }
  0x71   :  { %952 = vmatmul.mubr.bf16.gmra.mxu0 %v1857_v45  ;;  %1144 = vmatmul.mubr.bf16.gmra.mxu1 %v1858_v46  ;;  %v1938_v45 = vld [vmem:[%s2809_s0 + $0x210] ss:$12 sps:$4 sm:$0xff]   ;;  %v1939_v46 = vld [vmem:[%s2809_s0 + $0x2c0] ss:$12 sps:$4 sm:$0xff]  }
  0x72   :  { %959 = vmatprep.mubr.bf16.mxu0 %v1859_v47  ;;  %1151 = vmatprep.mubr.bf16.mxu1 %v1861_v48  ;;  %v1940_v47 = vld [vmem:[%s2809_s0 + $0x22c] ss:$12 sps:$4 sm:$0xff]  }
  0x73   :  { %v1942_v48 = vld [vmem:[%s2809_s0 + $0x2d8] ss:$12 sps:$4 sm:$0xff]  }
  0x79   :  { %960 = vmatmul.mubr.bf16.gmra.mxu0 %v1863_v49  ;;  %1152 = vmatmul.mubr.bf16.gmra.mxu1 %v1864_v50  ;;  %v1943_v49 = vld [vmem:[%s2809_s0 + $0x228] ss:$12 sps:$4 sm:$0xff]   ;;  %v1944_v50 = vld [vmem:[%s2809_s0 + $0x2f0] ss:$12 sps:$4 sm:$0xff]  }
  0x7a   :  { %967 = vmatprep.mubr.bf16.mxu0 %v1865_v51  ;;  %1702 = vmatprep.mubr.msk.bf16.mxu1 %vm774_vm0, %v1867_v52 }
  0x81   :  { %968 = vmatmul.mubr.bf16.gmra.mxu0 %v1868_v53  ;;  %1703 = vmatmul.mubr.msk.bf16.vlgmr.msra.gmra.mxu1 %vm774_vm0, %v1869_v54 }
  0x82   :  { %975 = vmatprep.mubr.bf16.mxu0 %v1870_v55  ;;  %1706 = vmatprep.mubr.msk.bf16.mxu1 %vm774_vm0, %v1872_v56 }
  0x89   :  { %976 = vmatmul.mubr.bf16.gmra.mxu0 %v1873_v57  ;;  %1707 = vmatmul.mubr.msk.bf16.gmra.mxu1 %vm774_vm0, %v1874_v58 }
  0x8a   :  { %983 = vmatprep.mubr.bf16.mxu0 %v1875_v59  ;;  %1710 = vmatprep.mubr.msk.bf16.mxu1 %vm774_vm0, %v1877_v60 }
  0x91   :  { %984 = vmatmul.mubr.bf16.gmra.mxu0 %v1878_v61  ;;  %1711 = vmatmul.mubr.msk.bf16.gmra.mxu1 %vm774_vm0, %v1879_v62 }
  0x92   :  { %991 = vmatprep.mubr.bf16.mxu0 %v1880_v63  ;;  %1714 = vmatprep.mubr.msk.bf16.mxu1 %vm774_vm0, %v1882_v0 }
  0x99   :  { %992 = vmatmul.mubr.bf16.gmra.mxu0 %v1883_v1  ;;  %1715 = vmatmul.mubr.msk.bf16.gmra.mxu1 %vm774_vm0, %v1884_v2 }
  0x9a   :  { %999 = vmatprep.mubr.bf16.mxu0 %v1885_v3  ;;  %1718 = vmatprep.mubr.msk.bf16.mxu1 %vm774_vm0, %v1887_v4 }
  0xa1   :  { %1000 = vmatmul.mubr.bf16.gmra.mxu0 %v1888_v5  ;;  %1719 = vmatmul.mubr.msk.bf16.gmra.mxu1 %vm774_vm0, %v1889_v6 }
  0xa2   :  { %1007 = vmatprep.mubr.bf16.mxu0 %v1890_v7  ;;  %1722 = vmatprep.mubr.msk.bf16.mxu1 %vm774_vm0, %v1892_v8 }
  0xa9   :  { %1008 = vmatmul.mubr.bf16.gmra.mxu0 %v1893_v9  ;;  %1723 = vmatmul.mubr.msk.bf16.gmra.mxu1 %vm774_vm0, %v1894_v10 }
  0xaa   :  { %1015 = vmatprep.mubr.bf16.mxu0 %v1895_v11  ;;  %1726 = vmatprep.mubr.msk.bf16.mxu1 %vm774_vm0, %v1897_v12 }
  0xb1   :  { %1016 = vmatmul.mubr.bf16.gmra.mxu0 %v1898_v13  ;;  %1727 = vmatmul.mubr.msk.bf16.gmra.mxu1 %vm774_vm0, %v1899_v14 }
  0xb2   :  { %1023 = vmatprep.mubr.bf16.mxu0 %v1900_v15  ;;  %1730 = vmatprep.mubr.msk.bf16.mxu1 %vm774_vm0, %v1902_v16 }
  0xb9   :  { %1024 = vmatmul.mubr.bf16.gmra.mxu0 %v1903_v17  ;;  %1731 = vmatmul.mubr.msk.bf16.gmra.mxu1 %vm774_vm0, %v1904_v18 }
  0xba   :  { %1031 = vmatprep.mubr.bf16.mxu0 %v1905_v19  ;;  %1734 = vmatprep.mubr.msk.bf16.mxu1 %vm774_vm0, %v1907_v20 }
  0xc1   :  { %1032 = vmatmul.mubr.bf16.gmra.mxu0 %v1908_v21  ;;  %1735 = vmatmul.mubr.msk.bf16.gmra.mxu1 %vm774_vm0, %v1909_v22 }
  0xc2   :  { %1039 = vmatprep.mubr.bf16.mxu0 %v1910_v23  ;;  %1738 = vmatprep.mubr.msk.bf16.mxu1 %vm774_vm0, %v1912_v24 }
  0xc9   :  { %1040 = vmatmul.mubr.bf16.gmra.mxu0 %v1913_v25  ;;  %1739 = vmatmul.mubr.msk.bf16.gmra.mxu1 %vm774_vm0, %v1914_v26 }
  0xca   :  { %1047 = vmatprep.mubr.bf16.mxu0 %v1915_v27  ;;  %1742 = vmatprep.mubr.msk.bf16.mxu1 %vm774_vm0, %v1917_v28 }
  0xd1   :  { %1048 = vmatmul.mubr.bf16.gmra.mxu0 %v1918_v29  ;;  %1743 = vmatmul.mubr.msk.bf16.gmra.mxu1 %vm774_vm0, %v1919_v30 }
  0xd2   :  { %1055 = vmatprep.mubr.bf16.mxu0 %v1920_v31  ;;  %1746 = vmatprep.mubr.msk.bf16.mxu1 %vm774_vm0, %v1922_v32 }
  0xd9   :  { %1056 = vmatmul.mubr.bf16.gmra.mxu0 %v1923_v33  ;;  %1747 = vmatmul.mubr.msk.bf16.gmra.mxu1 %vm774_vm0, %v1924_v34 }
  0xda   :  { %1063 = vmatprep.mubr.bf16.mxu0 %v1925_v35  ;;  %1750 = vmatprep.mubr.msk.bf16.mxu1 %vm774_vm0, %v1927_v36 }
  0xe1   :  { %1064 = vmatmul.mubr.bf16.gmra.mxu0 %v1928_v37  ;;  %1751 = vmatmul.mubr.msk.bf16.gmra.mxu1 %vm774_vm0, %v1929_v38 }
  0xe2   :  { %1071 = vmatprep.mubr.bf16.mxu0 %v1930_v39  ;;  %1754 = vmatprep.mubr.msk.bf16.mxu1 %vm774_vm0, %v1932_v40 }
  0xe9   :  { %1072 = vmatmul.mubr.bf16.gmra.mxu0 %v1933_v41  ;;  %1755 = vmatmul.mubr.msk.bf16.gmra.mxu1 %vm774_vm0, %v1934_v42 }
  0xea   :  { %1079 = vmatprep.mubr.bf16.mxu0 %v1935_v43  ;;  %1758 = vmatprep.mubr.msk.bf16.mxu1 %vm774_vm0, %v1937_v44 }
  0xf1   :  { %1080 = vmatmul.mubr.bf16.gmra.mxu0 %v1938_v45  ;;  %1759 = vmatmul.mubr.msk.bf16.gmra.mxu1 %vm774_vm0, %v1939_v46 }
  0xf2   :  { %1087 = vmatprep.mubr.bf16.mxu0 %v1940_v47  ;;  %1762 = vmatprep.mubr.msk.bf16.mxu1 %vm774_vm0, %v1942_v48 }
  0xf9   :  { %1088 = vmatmul.mubr.bf16.gmra.mxu0 %v1943_v49  ;;  %1763 = vmatmul.mubr.msk.bf16.gmra.mxu1 %vm774_vm0, %v1944_v50  ;;  %v2433_v49 = vld [vmem:[%s2810_s2] ss:$0 sm:$0xff] }
 0x101   :  { %v2372_v51 = vpop.f32.mrf.mxu0  ;;  %v2374_v52 = vpop.f32.mrf.mxu1 }
 0x103   :  { %v907_v53 = vpop.f32.mrf.mxu0  ;;  %v1099_v54 = vpop.f32.mrf.mxu1 }
 0x105   :  { %v2376_v55 = vpop.f32.mrf.mxu0  ;;  %v2378_v56 = vpop.f32.mrf.mxu1 }
 0x107   :  { %v910_v57 = vpop.f32.mrf.mxu0  ;;  %v1102_v58 = vpop.f32.mrf.mxu1 }
 0x109   :  { %v913_v59 = vpop.f32.mrf.mxu0  ;;  %v2380_v60 = vpop.f32.mrf.mxu1 }
 0x10a   :  { %v914_v54 = vadd.f32 %v2433_v49, %v913_v59 }
 0x10b   :  { %v915_v61 = vpop.f32.mrf.mxu0  ;;  %v1107_v62 = vpop.f32.mrf.mxu1 }
 0x10c   :  { %v906_v61 = vadd.f32 %v2433_v49, %v2372_v51 }
 0x10d   :  { %v916_v63 = vpop.f32.mrf.mxu0  ;;  %v2382_v0 = vpop.f32.mrf.mxu1 }
 0x10f   :  { %v918_v1 = vpop.f32.mrf.mxu0  ;;  %v1110_v2 = vpop.f32.mrf.mxu1 }
 0x111   :  { %v2384_v3 = vpop.f32.mrf.mxu0  ;;  %v2386_v4 = vpop.f32.mrf.mxu1 }
 0x113   :  { %v923_v5 = vpop.f32.mrf.mxu0  ;;  %v1115_v6 = vpop.f32.mrf.mxu1 }
 0x114   :  { %v917_v5 = vadd.f32 %v2433_v49, %v916_v63 }
 0x115   :  { %v2388_v7 = vpop.f32.mrf.mxu0  ;;  %v2390_v8 = vpop.f32.mrf.mxu1 }
 0x117   :  { %v926_v9 = vpop.f32.mrf.mxu0  ;;  %v1118_v10 = vpop.f32.mrf.mxu1 }
 0x118   :  { %v909_v10 = vadd.f32 %v2433_v49, %v2376_v55  ;;  %v922_v55 = vadd.f32 %v2433_v49, %v2384_v3  ;;  %v925_v3 = vadd.f32 %v2433_v49, %v2388_v7 }
 0x119   :  { %v929_v11 = vpop.f32.mrf.mxu0  ;;  %v2392_v12 = vpop.f32.mrf.mxu1 }
 0x11b   :  { %v931_v13 = vpop.f32.mrf.mxu0  ;;  %v1123_v14 = vpop.f32.mrf.mxu1 }
 0x11c   :  { %v930_v14 = vadd.f32 %v2433_v49, %v929_v11 }
 0x11d   :  { %v2394_v15 = vpop.f32.mrf.mxu0  ;;  %v2396_v16 = vpop.f32.mrf.mxu1 }
 0x11e   :  { %v933_v11 = vadd.f32 %v2433_v49, %v2394_v15 }
 0x11f   :  { %v934_v17 = vpop.f32.mrf.mxu0  ;;  %v1126_v18 = vpop.f32.mrf.mxu1 }
 0x121   :  { %v2398_v19 = vpop.f32.mrf.mxu0  ;;  %v2400_v20 = vpop.f32.mrf.mxu1 }
 0x122   :  { %v938_v7 = vadd.f32 %v2433_v49, %v2398_v19 }
 0x123   :  { %v939_v21 = vpop.f32.mrf.mxu0  ;;  %v1131_v22 = vpop.f32.mrf.mxu1 }
 0x125   :  { %v2402_v23 = vpop.f32.mrf.mxu0  ;;  %v2404_v24 = vpop.f32.mrf.mxu1 }
 0x126   :  { %v941_v19 = vadd.f32 %v2433_v49, %v2402_v23 }
 0x127   :  { %v942_v25 = vpop.f32.mrf.mxu0  ;;  %v1134_v26 = vpop.f32.mrf.mxu1 }
 0x129   :  { %v2406_v27 = vpop.f32.mrf.mxu0  ;;  %v2408_v28 = vpop.f32.mrf.mxu1 }
 0x12a   :  { %v946_v15 = vadd.f32 %v2433_v49, %v2406_v27 }
 0x12b   :  { %v947_v29 = vpop.f32.mrf.mxu0  ;;  %v1139_v30 = vpop.f32.mrf.mxu1 }
 0x12d   :  { %v2410_v31 = vpop.f32.mrf.mxu0  ;;  %v2412_v32 = vpop.f32.mrf.mxu1 }
 0x12e   :  { %v949_v27 = vadd.f32 %v2433_v49, %v2410_v31 }
 0x12f   :  { %v950_v33 = vpop.f32.mrf.mxu0  ;;  %v1142_v34 = vpop.f32.mrf.mxu1 }
 0x131   :  { %v2414_v35 = vpop.f32.mrf.mxu0  ;;  %v2416_v36 = vpop.f32.mrf.mxu1 }
 0x132   :  { %v954_v23 = vadd.f32 %v2433_v49, %v2414_v35 }
 0x133   :  { %v955_v37 = vpop.f32.mrf.mxu0  ;;  %v1147_v38 = vpop.f32.mrf.mxu1 }
 0x135   :  { %v2418_v39 = vpop.f32.mrf.mxu0  ;;  %v2420_v40 = vpop.f32.mrf.mxu1 }
 0x136   :  { %v957_v35 = vadd.f32 %v2433_v49, %v2418_v39 }
 0x137   :  { %v958_v41 = vpop.f32.mrf.mxu0  ;;  %v1150_v42 = vpop.f32.mrf.mxu1 }
 0x139   :  { %v2422_v43 = vpop.f32.mrf.mxu0  ;;  %v2424_v44 = vpop.f32.mrf.mxu1 }
 0x13a   :  { %v962_v31 = vadd.f32 %v2433_v49, %v2422_v43 }
 0x13b   :  { %v963_v45 = vpop.f32.mrf.mxu0  ;;  %v1155_v46 = vpop.f32.mrf.mxu1 }
 0x13d   :  { %v2426_v47 = vpop.f32.mrf.mxu0  ;;  %v2428_v48 = vpop.f32.mrf.mxu1 }
 0x13e   :  { %v965_v43 = vadd.f32 %v2433_v49, %v2426_v47 }
 0x13f   :  { %v966_v50 = vpop.f32.mrf.mxu0  ;;  %v1158_v53 = vpop.f32.mrf.mxu1 }
 0x141   :  { %v2436_v57 = vpop.f32.mrf.mxu0  ;;  %v1704_v58 = vpop.f32.mrf.mxu1 }
 0x142   :  { %v1203_v62 = vadd.f32 %v1704_v58, %v914_v54  ;;  %v970_v39 = vadd.f32 %v2433_v49, %v2436_v57 }
 0x143   :  { %v971_v1 = vpop.f32.mrf.mxu0  ;;  %v1194_v2 = vpop.f32.mrf.mxu1 }
 0x144   :  { %1451 = vst.msk [vmem:[%s2811_s3 + $0x10] sm:$0xff] %vm774_vm0, %v1203_v62  ;;  %v1195_v6 = vadd.f32 %v1194_v2, %v906_v61 }
 0x145   :  { %v2445_v9 = vpop.f32.mrf.mxu0  ;;  %v1705_v59 = vpop.f32.mrf.mxu1 }
 0x146   :  { %1449 = vst.msk [vmem:[%s2811_s3] sm:$0xff] %vm774_vm0, %v1195_v6  ;;  %v1206_v51 = vadd.f32 %v1705_v59, %v917_v5  ;;  %v973_v57 = vadd.f32 %v2433_v49, %v2445_v9 }
 0x147   :  { %v974_v13 = vpop.f32.mrf.mxu0  ;;  %v1197_v63 = vpop.f32.mrf.mxu1 }
 0x148   :  { %1452 = vst.msk [vmem:[%s2811_s3 + $0x18] sm:$0xff] %vm774_vm0, %v1206_v51  ;;  %v1198_v17 = vadd.f32 %v1197_v63, %v909_v10 }
 0x149   :  { %v977_v18 = vpop.f32.mrf.mxu0  ;;  %v1708_v21 = vpop.f32.mrf.mxu1 }
 0x14a   :  { %1450 = vst.msk [vmem:[%s2811_s3 + $0x8] sm:$0xff] %vm774_vm0, %v1198_v17  ;;  %v1219_v22 = vadd.f32 %v1708_v21, %v930_v14  ;;  %v978_v47 = vadd.f32 %v2433_v49, %v977_v18 }
 0x14b   :  { %v979_v25 = vpop.f32.mrf.mxu0  ;;  %v1210_v26 = vpop.f32.mrf.mxu1 }
 0x14c   :  { %1455 = vst.msk [vmem:[%s2811_s3 + $0x30] sm:$0xff] %vm774_vm0, %v1219_v22  ;;  %v1211_v29 = vadd.f32 %v1210_v26, %v922_v55 }
 0x14d   :  { %v980_v30 = vpop.f32.mrf.mxu0  ;;  %v1709_v33 = vpop.f32.mrf.mxu1 }
 0x14e   :  { %1453 = vst.msk [vmem:[%s2811_s3 + $0x20] sm:$0xff] %vm774_vm0, %v1211_v29  ;;  %v1222_v34 = vadd.f32 %v1709_v33, %v933_v11  ;;  %v981_v18 = vadd.f32 %v2433_v49, %v980_v30 }
 0x14f   :  { %v982_v37 = vpop.f32.mrf.mxu0  ;;  %v1213_v38 = vpop.f32.mrf.mxu1 }
 0x150   :  { %1456 = vst.msk [vmem:[%s2811_s3 + $0x38] sm:$0xff] %vm774_vm0, %v1222_v34  ;;  %v1214_v41 = vadd.f32 %v1213_v38, %v925_v3 }
 0x151   :  { %v985_v42 = vpop.f32.mrf.mxu0  ;;  %v1712_v45 = vpop.f32.mrf.mxu1 }
 0x152   :  { %1454 = vst.msk [vmem:[%s2811_s3 + $0x28] sm:$0xff] %vm774_vm0, %v1214_v41  ;;  %v1235_v46 = vadd.f32 %v1712_v45, %v946_v15  ;;  %v986_v9 = vadd.f32 %v2433_v49, %v985_v42 }
 0x153   :  { %v987_v50 = vpop.f32.mrf.mxu0  ;;  %v1226_v53 = vpop.f32.mrf.mxu1 }
 0x154   :  { %1459 = vst.msk [vmem:[%s2811_s3 + $0x50] sm:$0xff] %vm774_vm0, %v1235_v46  ;;  %v1227_v54 = vadd.f32 %v1226_v53, %v938_v7 }
 0x155   :  { %v988_v58 = vpop.f32.mrf.mxu0  ;;  %v1713_v61 = vpop.f32.mrf.mxu1 }
 0x156   :  { %1457 = vst.msk [vmem:[%s2811_s3 + $0x40] sm:$0xff] %vm774_vm0, %v1227_v54  ;;  %v1238_v62 = vadd.f32 %v1713_v61, %v949_v27  ;;  %v989_v42 = vadd.f32 %v2433_v49, %v988_v58 }
 0x157   :  { %v990_v1 = vpop.f32.mrf.mxu0  ;;  %v1229_v2 = vpop.f32.mrf.mxu1 }
 0x158   :  { %1460 = vst.msk [vmem:[%s2811_s3 + $0x58] sm:$0xff] %vm774_vm0, %v1238_v62  ;;  %v1230_v5 = vadd.f32 %v1229_v2, %v941_v19 }
 0x159   :  { %v993_v6 = vpop.f32.mrf.mxu0  ;;  %v1716_v59 = vpop.f32.mrf.mxu1 }
 0x15a   :  { %1458 = vst.msk [vmem:[%s2811_s3 + $0x48] sm:$0xff] %vm774_vm0, %v1230_v5  ;;  %v1251_v10 = vadd.f32 %v1716_v59, %v962_v31  ;;  %v994_v30 = vadd.f32 %v2433_v49, %v993_v6 }
 0x15b   :  { %v995_v51 = vpop.f32.mrf.mxu0  ;;  %v1242_v13 = vpop.f32.mrf.mxu1 }
 0x15c   :  { %1463 = vst.msk [vmem:[%s2811_s3 + $0x70] sm:$0xff] %vm774_vm0, %v1251_v10  ;;  %v1243_v63 = vadd.f32 %v1242_v13, %v954_v23 }
 0x15d   :  { %v996_v14 = vpop.f32.mrf.mxu0  ;;  %v1717_v17 = vpop.f32.mrf.mxu1 }
 0x15e   :  { %1461 = vst.msk [vmem:[%s2811_s3 + $0x60] sm:$0xff] %vm774_vm0, %v1243_v63  ;;  %v1254_v21 = vadd.f32 %v1717_v17, %v965_v43  ;;  %v997_v61 = vadd.f32 %v2433_v49, %v996_v14 }
 0x15f   :  { %v998_v55 = vpop.f32.mrf.mxu0  ;;  %v1245_v22 = vpop.f32.mrf.mxu1 }
 0x160   :  { %1464 = vst.msk [vmem:[%s2811_s3 + $0x78] sm:$0xff] %vm774_vm0, %v1254_v21  ;;  %v1246_v25 = vadd.f32 %v1245_v22, %v957_v35 }
 0x161   :  { %v1001_v26 = vpop.f32.mrf.mxu0  ;;  %v1720_v11 = vpop.f32.mrf.mxu1 }
 0x162   :  { %1462 = vst.msk [vmem:[%s2811_s3 + $0x68] sm:$0xff] %vm774_vm0, %v1246_v25  ;;  %v1267_v29 = vadd.f32 %v1720_v11, %v978_v47  ;;  %v1002_v58 = vadd.f32 %v2433_v49, %v1001_v26 }
 0x163   :  { %v1003_v33 = vpop.f32.mrf.mxu0  ;;  %v1258_v3 = vpop.f32.mrf.mxu1 }
 0x164   :  { %1467 = vst.msk [vmem:[%s2811_s3 + $0x90] sm:$0xff] %vm774_vm0, %v1267_v29  ;;  %v1259_v34 = vadd.f32 %v1258_v3, %v970_v39 }
 0x165   :  { %v1004_v37 = vpop.f32.mrf.mxu0  ;;  %v1721_v38 = vpop.f32.mrf.mxu1 }
 0x166   :  { %1465 = vst.msk [vmem:[%s2811_s3 + $0x80] sm:$0xff] %vm774_vm0, %v1259_v34  ;;  %v1270_v15 = vadd.f32 %v1721_v38, %v981_v18  ;;  %v1005_v21 = vadd.f32 %v2433_v49, %v1004_v37 }
 0x167   :  { %v1006_v41 = vpop.f32.mrf.mxu0  ;;  %v1261_v45 = vpop.f32.mrf.mxu1 }
 0x168   :  { %1468 = vst.msk [vmem:[%s2811_s3 + $0x98] sm:$0xff] %vm774_vm0, %v1270_v15  ;;  %v1262_v7 = vadd.f32 %v1261_v45, %v973_v57 }
 0x169   :  { %v1009_v46 = vpop.f32.mrf.mxu0  ;;  %v1724_v50 = vpop.f32.mrf.mxu1 }
 0x16a   :  { %1466 = vst.msk [vmem:[%s2811_s3 + $0x88] sm:$0xff] %vm774_vm0, %v1262_v7  ;;  %v1283_v53 = vadd.f32 %v1724_v50, %v994_v30  ;;  %v1010_v6 = vadd.f32 %v2433_v49, %v1009_v46 }
 0x16b   :  { %v1011_v27 = vpop.f32.mrf.mxu0  ;;  %v1274_v54 = vpop.f32.mrf.mxu1 }
 0x16c   :  { %1471 = vst.msk [vmem:[%s2811_s3 + $0xb0] sm:$0xff] %vm774_vm0, %v1283_v53  ;;  %v1275_v19 = vadd.f32 %v1274_v54, %v986_v9 }
 0x16d   :  { %v1012_v62 = vpop.f32.mrf.mxu0  ;;  %v1725_v1 = vpop.f32.mrf.mxu1 }
 0x16e   :  { %1469 = vst.msk [vmem:[%s2811_s3 + $0xa0] sm:$0xff] %vm774_vm0, %v1275_v19  ;;  %v1286_v2 = vadd.f32 %v1725_v1, %v997_v61  ;;  %v1013_v63 = vadd.f32 %v2433_v49, %v1012_v62 }
 0x16f   :  { %v1014_v31 = vpop.f32.mrf.mxu0  ;;  %v1277_v5 = vpop.f32.mrf.mxu1 }
 0x170   :  { %1472 = vst.msk [vmem:[%s2811_s3 + $0xb8] sm:$0xff] %vm774_vm0, %v1286_v2  ;;  %v1278_v59 = vadd.f32 %v1277_v5, %v989_v42 }
 0x171   :  { %v1017_v23 = vpop.f32.mrf.mxu0  ;;  %v1728_v10 = vpop.f32.mrf.mxu1 }
 0x172   :  { %1470 = vst.msk [vmem:[%s2811_s3 + $0xa8] sm:$0xff] %vm774_vm0, %v1278_v59  ;;  %v1299_v51 = vadd.f32 %v1728_v10, %v1010_v6  ;;  %v1018_v39 = vadd.f32 %v2433_v49, %v1017_v23 }
 0x173   :  { %v1019_v13 = vpop.f32.mrf.mxu0  ;;  %v1290_v43 = vpop.f32.mrf.mxu1 }
 0x174   :  { %1475 = vst.msk [vmem:[%s2811_s3 + $0xd0] sm:$0xff] %vm774_vm0, %v1299_v51  ;;  %v1291_v14 = vadd.f32 %v1290_v43, %v1002_v58 }
 0x175   :  { %v1020_v17 = vpop.f32.mrf.mxu0  ;;  %v1729_v35 = vpop.f32.mrf.mxu1 }
 0x176   :  { %1473 = vst.msk [vmem:[%s2811_s3 + $0xc0] sm:$0xff] %vm774_vm0, %v1291_v14  ;;  %v1302_v55 = vadd.f32 %v1729_v35, %v1013_v63  ;;  %v1021_v57 = vadd.f32 %v2433_v49, %v1020_v17 }
 0x177   :  { %v1022_v22 = vpop.f32.mrf.mxu0  ;;  %v1293_v47 = vpop.f32.mrf.mxu1 }
 0x178   :  { %1476 = vst.msk [vmem:[%s2811_s3 + $0xd8] sm:$0xff] %vm774_vm0, %v1302_v55  ;;  %v1294_v25 = vadd.f32 %v1293_v47, %v1005_v21 }
 0x179   :  { %v1025_v26 = vpop.f32.mrf.mxu0  ;;  %v1732_v11 = vpop.f32.mrf.mxu1 }
 0x17a   :  { %1474 = vst.msk [vmem:[%s2811_s3 + $0xc8] sm:$0xff] %vm774_vm0, %v1294_v25  ;;  %v1026_v29 = vadd.f32 %v2433_v49, %v1025_v26 }
 0x17b   :  { %v1027_v33 = vpop.f32.mrf.mxu0  ;;  %v1306_v3 = vpop.f32.mrf.mxu1 }
 0x17c   :  { %v1315_v18 = vadd.f32 %v1732_v11, %v1026_v29  ;;  %v1307_v34 = vadd.f32 %v1306_v3, %v1018_v39 }
 0x17d   :  { %v1028_v37 = vpop.f32.mrf.mxu0  ;;  %v1733_v38 = vpop.f32.mrf.mxu1 }
 0x17e   :  { %1479 = vst.msk [vmem:[%s2811_s3 + $0xf0] sm:$0xff] %vm774_vm0, %v1315_v18  ;;  %1477 = vst.msk [vmem:[%s2811_s3 + $0xe0] sm:$0xff] %vm774_vm0, %v1307_v34  ;;  %v1029_v15 = vadd.f32 %v2433_v49, %v1028_v37 }
 0x17f   :  { %v1030_v41 = vpop.f32.mrf.mxu0  ;;  %v1309_v45 = vpop.f32.mrf.mxu1 }
 0x180   :  { %v1318_v30 = vadd.f32 %v1733_v38, %v1029_v15  ;;  %v1310_v7 = vadd.f32 %v1309_v45, %v1021_v57 }
 0x181   :  { %v1033_v46 = vpop.f32.mrf.mxu0  ;;  %v1736_v50 = vpop.f32.mrf.mxu1 }
 0x182   :  { %1480 = vst.msk [vmem:[%s2811_s3 + $0xf8] sm:$0xff] %vm774_vm0, %v1318_v30  ;;  %1478 = vst.msk [vmem:[%s2811_s3 + $0xe8] sm:$0xff] %vm774_vm0, %v1310_v7  ;;  %v1034_v9 = vadd.f32 %v2433_v49, %v1033_v46  ;;  %v1106_v46 = vadd.f32 %v2433_v49, %v2380_v60 }
 0x183   :  { %v1035_v53 = vpop.f32.mrf.mxu0  ;;  %v1322_v27 = vpop.f32.mrf.mxu1 }
 0x184   :  { %v1323_v54 = vadd.f32 %v1322_v27, %v1034_v9  ;;  %v1098_v27 = vadd.f32 %v2433_v49, %v2374_v52 }
 0x185   :  { %v1036_v61 = vpop.f32.mrf.mxu0  ;;  %v1737_v19 = vpop.f32.mrf.mxu1 }
 0x186   :  { %1481 = vst.msk [vmem:[%s2811_s3 + $0x100] sm:$0xff] %vm774_vm0, %v1323_v54  ;;  %v1037_v62 = vadd.f32 %v2433_v49, %v1036_v61 }
 0x187   :  { %v1038_v1 = vpop.f32.mrf.mxu0  ;;  %v1325_v42 = vpop.f32.mrf.mxu1 }
 0x188   :  { %v1326_v2 = vadd.f32 %v1325_v42, %v1037_v62  ;;  %v1109_v1 = vadd.f32 %v2433_v49, %v2382_v0 }
 0x189   :  { %v1041_v31 = vpop.f32.mrf.mxu0  ;;  %v1740_v5 = vpop.f32.mrf.mxu1 }
 0x18a   :  { %1482 = vst.msk [vmem:[%s2811_s3 + $0x108] sm:$0xff] %vm774_vm0, %v1326_v2  ;;  %v1042_v6 = vadd.f32 %v2433_v49, %v1041_v31  ;;  %v1101_v31 = vadd.f32 %v2433_v49, %v2378_v56 }
 0x18b   :  { %v1043_v59 = vpop.f32.mrf.mxu0  ;;  %v1338_v23 = vpop.f32.mrf.mxu1 }
 0x18c   :  { %v1331_v10 = vadd.f32 %v1736_v50, %v1042_v6 }
 0x18d   :  { %v1044_v58 = vpop.f32.mrf.mxu0  ;;  %v1741_v51 = vpop.f32.mrf.mxu1 }
 0x18e   :  { %1483 = vst.msk [vmem:[%s2811_s3 + $0x110] sm:$0xff] %vm774_vm0, %v1331_v10  ;;  %v1045_v13 = vadd.f32 %v2433_v49, %v1044_v58 }
 0x18f   :  { %v1046_v43 = vpop.f32.mrf.mxu0  ;;  %v1341_v63 = vpop.f32.mrf.mxu1 }
 0x190   :  { %v1334_v14 = vadd.f32 %v1737_v19, %v1045_v13  ;;  %v1114_v13 = vadd.f32 %v2433_v49, %v2386_v4 }
 0x191   :  { %v1049_v17 = vpop.f32.mrf.mxu0  ;;  %v2630_v35 = vpop.f32.mrf.mxu1 }
 0x192   :  { %1484 = vst.msk [vmem:[%s2811_s3 + $0x118] sm:$0xff] %vm774_vm0, %v1334_v14  ;;  %v1050_v21 = vadd.f32 %v2433_v49, %v1049_v17  ;;  %v1125_v17 = vadd.f32 %v2433_v49, %v2396_v16 }
 0x193   :  { %v1051_v55 = vpop.f32.mrf.mxu0  ;;  %v1354_v22 = vpop.f32.mrf.mxu1 }
 0x194   :  { %v1339_v47 = vadd.f32 %v1338_v23, %v1050_v21  ;;  %v1122_v23 = vadd.f32 %v2433_v49, %v2392_v12 }
 0x195   :  { %v1052_v25 = vpop.f32.mrf.mxu0  ;;  %v2637_v26 = vpop.f32.mrf.mxu1 }
 0x196   :  { %1485 = vst.msk [vmem:[%s2811_s3 + $0x120] sm:$0xff] %vm774_vm0, %v1339_v47  ;;  %v1053_v11 = vadd.f32 %v2433_v49, %v1052_v25  ;;  %v1117_v47 = vadd.f32 %v2433_v49, %v2390_v8 }
 0x197   :  { %v1054_v39 = vpop.f32.mrf.mxu0  ;;  %v1357_v29 = vpop.f32.mrf.mxu1 }
 0x198   :  { %v1342_v33 = vadd.f32 %v1341_v63, %v1053_v11  ;;  %v1138_v39 = vadd.f32 %v2433_v49, %v2408_v28 }
 0x199   :  { %v1057_v3 = vpop.f32.mrf.mxu0  ;;  %v2644_v18 = vpop.f32.mrf.mxu1 }
 0x19a   :  { %1486 = vst.msk [vmem:[%s2811_s3 + $0x128] sm:$0xff] %vm774_vm0, %v1342_v33  ;;  %v1058_v34 = vadd.f32 %v2433_v49, %v1057_v3 }
 0x19b   :  { %v1059_v37 = vpop.f32.mrf.mxu0  ;;  %v2651_v38 = vpop.f32.mrf.mxu1 }
 0x19c   :  { %v1347_v57 = vadd.f32 %v1740_v5, %v1058_v34  ;;  %v1130_v34 = vadd.f32 %v2433_v49, %v2400_v20 }
 0x19d   :  { %v1060_v15 = vpop.f32.mrf.mxu0  ;;  %v2653_v41 = vpop.f32.mrf.mxu1 }
 0x19e   :  { %1487 = vst.msk [vmem:[%s2811_s3 + $0x130] sm:$0xff] %vm774_vm0, %v1347_v57  ;;  %v1061_v45 = vadd.f32 %v2433_v49, %v1060_v15  ;;  %v1141_v15 = vadd.f32 %v2433_v49, %v2412_v32 }
 0x19f   :  { %v1062_v30 = vpop.f32.mrf.mxu0  ;;  %v2660_v7 = vpop.f32.mrf.mxu1 }
 0x1a0   :  { %v1350_v50 = vadd.f32 %v1741_v51, %v1061_v45 }
 0x1a1   :  { %v1065_v9 = vpop.f32.mrf.mxu0  ;;  %v1752_v53 = vpop.f32.mrf.mxu1 }
 0x1a2   :  { %1488 = vst.msk [vmem:[%s2811_s3 + $0x138] sm:$0xff] %vm774_vm0, %v1350_v50  ;;  %v1066_v54 = vadd.f32 %v2433_v49, %v1065_v9  ;;  %v1395_v61 = vadd.f32 %v1752_v53, %v1106_v46  ;;  %v1133_v50 = vadd.f32 %v2433_v49, %v2404_v24 }
 0x1a3   :  { %v1067_v19 = vpop.f32.mrf.mxu0  ;;  %v1386_v62 = vpop.f32.mrf.mxu1 }
 0x1a4   :  { %v1355_v60 = vadd.f32 %v1354_v22, %v1066_v54  ;;  %1499 = vst.msk [vmem:[%s2811_s3 + $0x190] sm:$0xff] %vm774_vm0, %v1395_v61  ;;  %v1387_v52 = vadd.f32 %v1386_v62, %v1098_v27  ;;  %v1154_v27 = vadd.f32 %v2433_v49, %v2424_v44  ;;  %v1146_v62 = vadd.f32 %v2433_v49, %v2416_v36 }
 0x1a5   :  { %v1068_v42 = vpop.f32.mrf.mxu0  ;;  %v1753_v2 = vpop.f32.mrf.mxu1 }
 0x1a6   :  { %1489 = vst.msk [vmem:[%s2811_s3 + $0x140] sm:$0xff] %vm774_vm0, %v1355_v60  ;;  %1497 = vst.msk [vmem:[%s2811_s3 + $0x180] sm:$0xff] %vm774_vm0, %v1387_v52  ;;  %v1069_v0 = vadd.f32 %v2433_v49, %v1068_v42  ;;  %v1398_v5 = vadd.f32 %v1753_v2, %v1109_v1  ;;  %v1157_v52 = vadd.f32 %v2433_v49, %v2428_v48 }
 0x1a7   :  { %v1070_v6 = vpop.f32.mrf.mxu0  ;;  %v1389_v59 = vpop.f32.mrf.mxu1 }
 0x1a8   :  { %v1358_v10 = vadd.f32 %v1357_v29, %v1069_v0  ;;  %1500 = vst.msk [vmem:[%s2811_s3 + $0x198] sm:$0xff] %vm774_vm0, %v1398_v5  ;;  %v1390_v56 = vadd.f32 %v1389_v59, %v1101_v31  ;;  %v1149_v0 = vadd.f32 %v2433_v49, %v2420_v40 }
 0x1a9   :  { %v1073_v58 = vpop.f32.mrf.mxu0  ;;  %v1756_v51 = vpop.f32.mrf.mxu1 }
 0x1aa   :  { %1490 = vst.msk [vmem:[%s2811_s3 + $0x148] sm:$0xff] %vm774_vm0, %v1358_v10  ;;  %1498 = vst.msk [vmem:[%s2811_s3 + $0x188] sm:$0xff] %vm774_vm0, %v1390_v56  ;;  %v1074_v12 = vadd.f32 %v2433_v49, %v1073_v58  ;;  %v1411_v43 = vadd.f32 %v1756_v51, %v1122_v23 }
 0x1ab   :  { %v1075_v63 = vpop.f32.mrf.mxu0  ;;  %v1402_v14 = vpop.f32.mrf.mxu1 }
 0x1ac   :  { %v1363_v4 = vadd.f32 %v2630_v35, %v1074_v12  ;;  %1503 = vst.msk [vmem:[%s2811_s3 + $0x1b0] sm:$0xff] %vm774_vm0, %v1411_v43  ;;  %v1403_v21 = vadd.f32 %v1402_v14, %v1114_v13 }
 0x1ad   :  { %v1076_v55 = vpop.f32.mrf.mxu0  ;;  %v1757_v22 = vpop.f32.mrf.mxu1 }
 0x1ae   :  { %1491 = vst.msk [vmem:[%s2811_s3 + $0x150] sm:$0xff] %vm774_vm0, %v1363_v4  ;;  %1501 = vst.msk [vmem:[%s2811_s3 + $0x1a0] sm:$0xff] %vm774_vm0, %v1403_v21  ;;  %v1077_v16 = vadd.f32 %v2433_v49, %v1076_v55  ;;  %v1414_v35 = vadd.f32 %v1757_v22, %v1125_v17 }
 0x1af   :  { %v1078_v25 = vpop.f32.mrf.mxu0  ;;  %v1405_v11 = vpop.f32.mrf.mxu1 }
 0x1b0   :  { %v1366_v8 = vadd.f32 %v2637_v26, %v1077_v16  ;;  %1504 = vst.msk [vmem:[%s2811_s3 + $0x1b8] sm:$0xff] %vm774_vm0, %v1414_v35  ;;  %v1406_v29 = vadd.f32 %v1405_v11, %v1117_v47 }
 0x1b1   :  { %v1081_v33 = vpop.f32.mrf.mxu0  ;;  %v1760_v3 = vpop.f32.mrf.mxu1 }
 0x1b2   :  { %1492 = vst.msk [vmem:[%s2811_s3 + $0x158] sm:$0xff] %vm774_vm0, %v1366_v8  ;;  %1502 = vst.msk [vmem:[%s2811_s3 + $0x1a8] sm:$0xff] %vm774_vm0, %v1406_v29  ;;  %v1082_v28 = vadd.f32 %v2433_v49, %v1081_v33  ;;  %v1427_v26 = vadd.f32 %v1760_v3, %v1138_v39 }
 0x1b3   :  { %v1083_v37 = vpop.f32.mrf.mxu0  ;;  %v1418_v57 = vpop.f32.mrf.mxu1 }
 0x1b4   :  { %v1371_v20 = vadd.f32 %v2651_v38, %v1082_v28  ;;  %1507 = vst.msk [vmem:[%s2811_s3 + $0x1d0] sm:$0xff] %vm774_vm0, %v1427_v26  ;;  %v1419_v45 = vadd.f32 %v1418_v57, %v1130_v34 }
 0x1b5   :  { %v1084_v30 = vpop.f32.mrf.mxu0  ;;  %v1761_v46 = vpop.f32.mrf.mxu1 }
 0x1b6   :  { %1493 = vst.msk [vmem:[%s2811_s3 + $0x160] sm:$0xff] %vm774_vm0, %v1371_v20  ;;  %1505 = vst.msk [vmem:[%s2811_s3 + $0x1c0] sm:$0xff] %vm774_vm0, %v1419_v45  ;;  %v1085_v32 = vadd.f32 %v2433_v49, %v1084_v30  ;;  %v1430_v38 = vadd.f32 %v1761_v46, %v1141_v15 }
 0x1b7   :  { %v1086_v9 = vpop.f32.mrf.mxu0  ;;  %v1421_v53 = vpop.f32.mrf.mxu1 }
 0x1b8   :  { %v1374_v24 = vadd.f32 %v2660_v7, %v1085_v32  ;;  %1508 = vst.msk [vmem:[%s2811_s3 + $0x1d8] sm:$0xff] %vm774_vm0, %v1430_v38  ;;  %v1422_v54 = vadd.f32 %v1421_v53, %v1133_v50 }
 0x1b9   :  { %v1089_v61 = vpop.f32.mrf.mxu0  ;;  %v1764_v19 = vpop.f32.mrf.mxu1 }
 0x1ba   :  { %1494 = vst.msk [vmem:[%s2811_s3 + $0x168] sm:$0xff] %vm774_vm0, %v1374_v24  ;;  %1506 = vst.msk [vmem:[%s2811_s3 + $0x1c8] sm:$0xff] %vm774_vm0, %v1422_v54  ;;  %v1090_v44 = vadd.f32 %v2433_v49, %v1089_v61  ;;  %v1443_v7 = vadd.f32 %v1764_v19, %v1154_v27 }
 0x1bb   :  { %v1091_v1 = vpop.f32.mrf.mxu0  ;;  %v1434_v60 = vpop.f32.mrf.mxu1 }
 0x1bc   :  { %v1379_v36 = vadd.f32 %v2644_v18, %v1090_v44  ;;  %1511 = vst.msk [vmem:[%s2811_s3 + $0x1f0] sm:$0xff] %vm774_vm0, %v1443_v7  ;;  %v1435_v42 = vadd.f32 %v1434_v60, %v1146_v62 }
 0x1bd   :  { %v1092_v2 = vpop.f32.mrf.mxu0  ;;  %v1765_v31 = vpop.f32.mrf.mxu1 }
 0x1be   :  { %1495 = vst.msk [vmem:[%s2811_s3 + $0x170] sm:$0xff] %vm774_vm0, %v1379_v36  ;;  %1509 = vst.msk [vmem:[%s2811_s3 + $0x1e0] sm:$0xff] %vm774_vm0, %v1435_v42  ;;  %v1093_v48 = vadd.f32 %v2433_v49, %v1092_v2  ;;  %v1446_v18 = vadd.f32 %v1765_v31, %v1157_v52 }
 0x1bf   :  { %v1094_v5 = vpop.f32.mrf.mxu0  ;;  %v1437_v6 = vpop.f32.mrf.mxu1 }
 0x1c0   :  { %v1382_v59 = vadd.f32 %v2653_v41, %v1093_v48  ;;  %1512 = vst.msk [vmem:[%s2811_s3 + $0x1f8] sm:$0xff] %vm774_vm0, %v1446_v18  ;;  %v1438_v40 = vadd.f32 %v1437_v6, %v1149_v0 }
 0x1c2   :  { %1496 = vst.msk [vmem:[%s2811_s3 + $0x178] sm:$0xff] %vm774_vm0, %v1382_v59  ;;  %1510 = vst.msk [vmem:[%s2811_s3 + $0x1e8] sm:$0xff] %vm774_vm0, %v1438_v40 }

</bundles_post_ra>
